<compile_context>
chip_gen: v7x
topology: tpu7x:2x2x1
jax: 0.10.0
libtpu: 0.0.40
codegen_flags: <defaults>
</compile_context>

<pallas_src>
import functools

import jax
import jax.numpy as jnp
from jax.experimental import pallas as pl
from jax.experimental.pallas import tpu as pltpu

INPUT_DIM = 28 * 28          # 784
END_LAYER = 256
MID_LAYER = 32
MID_PAD = 128                # bottleneck padded to one full lane tile (exact zeros)


def _round_up(a, m):
    return (a + m - 1) // m * m


def autoencoder_kernel(x_ref,
                       w1_ref, b1_ref,
                       w2_ref, b2_ref,
                       w3_ref, b3_ref,
                       w4_ref, b4_ref,
                       o_ref):
    """Fused forward: 3x (linear + ReLU) + (linear + sigmoid).

    Matmul operands are bf16 (MXU peak path) with f32 accumulation; bias add,
    ReLU and sigmoid stay in f32 (keeps v5e's VPU happy and full precision on
    the elementwise path).  Weights (~1 MiB bf16) are replicated blocks and
    stay VMEM-resident; only the x/out batch tiles stream over HBM.
    """
    x = x_ref[...].astype(jnp.bfloat16)

    # linear1 + relu : (bb, 784) @ (784, 256) + (1, 256)
    h = jnp.dot(x, w1_ref[...], preferred_element_type=jnp.float32) + b1_ref[...]
    h = jnp.maximum(h, 0.0)

    # middle1 + relu : (bb, 256) @ (256, 128) + (1, 128)   (32 padded to 128)
    h = jnp.dot(h.astype(jnp.bfloat16), w2_ref[...],
                preferred_element_type=jnp.float32) + b2_ref[...]
    h = jnp.maximum(h, 0.0)

    # middle2 + relu : (bb, 128) @ (128, 256) + (1, 256)
    h = jnp.dot(h.astype(jnp.bfloat16), w3_ref[...],
                preferred_element_type=jnp.float32) + b3_ref[...]
    h = jnp.maximum(h, 0.0)

    # linear2 + sigmoid : (bb, 256) @ (256, 784) + (1, 784)
    y = jnp.dot(h.astype(jnp.bfloat16), w4_ref[...],
                preferred_element_type=jnp.float32) + b4_ref[...]
    o_ref[...] = jax.nn.sigmoid(y).astype(o_ref.dtype)


def prepare_params(params):
    """One-time weight prep (hoisted OUT of the per-call forward).

    Pads the 32-wide bottleneck to 128 lanes with exact zeros (math unchanged:
    zero K-rows / zero N-cols) and casts matmul weights to bf16; biases stay
    f32.  Call this once and reuse the result for every forward call.
    """
    w1, b1, w2, b2, w3, b3, w4, b4 = params
    cf = jnp.bfloat16
    pad_n = MID_PAD - MID_LAYER

    w1p = jnp.asarray(w1, cf)                                             # (784, 256)
    b1p = jnp.asarray(b1, jnp.float32).reshape(1, END_LAYER)
    w2p = jnp.pad(jnp.asarray(w2, jnp.float32),
                  ((0, 0), (0, pad_n))).astype(cf)                        # (256, 128)
    b2p = jnp.pad(jnp.asarray(b2, jnp.float32).reshape(1, MID_LAYER),
                  ((0, 0), (0, pad_n)))                                   # (1, 128)
    w3p = jnp.pad(jnp.asarray(w3, jnp.float32),
                  ((0, pad_n), (0, 0))).astype(cf)                        # (128, 256)
    b3p = jnp.asarray(b3, jnp.float32).reshape(1, END_LAYER)
    w4p = jnp.asarray(w4, cf)                                             # (256, 784)
    b4p = jnp.asarray(b4, jnp.float32).reshape(1, INPUT_DIM)
    return (w1p, b1p, w2p, b2p, w3p, b3p, w4p, b4p)


@functools.partial(jax.jit, static_argnames=("block_b",))
def autoencoder_forward(x, prepared_params, block_b=256):
    """Fused autoencoder forward.  `prepared_params` must come from prepare_params.

    block_b is the batch tile (tunable): 256 fits v5e's 16 MiB scoped-VMEM
    default; 512-1024 is fine on v6e; re-budget for v7x's 64 MiB VMEM before
    raising it there.
    """
    w1, b1, w2, b2, w3, b3, w4, b4 = prepared_params
    B, D = x.shape
    assert D == INPUT_DIM

    # Batch tile: 16-row aligned (bf16 sublane pack) and capped at ceil(B/2) so
    # there are >= 2 grid steps -> the "parallel" axis can use both v7x cores.
    bb = max(16, min(block_b, _round_up(pl.cdiv(B, 2), 16)))
    grid = (pl.cdiv(B, bb),)   # partial last block: store is masked by Pallas

    # Weights/biases replicated across the batch grid (constant block index),
    # so they are fetched once and stay VMEM-resident.
    def rep(shape):
        return pl.BlockSpec(shape, lambda i: (0, 0))

    return pl.pallas_call(
        autoencoder_kernel,
        out_shape=jax.ShapeDtypeStruct((B, INPUT_DIM), x.dtype),
        grid_spec=pltpu.PrefetchScalarGridSpec(
            num_scalar_prefetch=0,
            grid=grid,
            in_specs=[
                pl.BlockSpec((bb, INPUT_DIM), lambda i: (i, 0)),   # x tile
                rep((INPUT_DIM, END_LAYER)), rep((1, END_LAYER)),  # linear1
                rep((END_LAYER, MID_PAD)), rep((1, MID_PAD)),      # middle1
                rep((MID_PAD, END_LAYER)), rep((1, END_LAYER)),    # middle2
                rep((END_LAYER, INPUT_DIM)), rep((1, INPUT_DIM)),  # linear2
            ],
            out_specs=pl.BlockSpec((bb, INPUT_DIM), lambda i: (i, 0)),
        ),
        compiler_params=pltpu.CompilerParams(
            dimension_semantics=("parallel",),   # shard batch tiles across TCs (v7x)
        ),
    )(x, w1, b1, w2, b2, w3, b3, w4, b4)


def init_params(key):
    """Deterministic params matching nn.Linear's U(-1/sqrt(in), 1/sqrt(in)) init."""
    def linear(key, fan_in, fan_out):
        kw, kb = jax.random.split(key)
        bound = 1.0 / jnp.sqrt(jnp.float32(fan_in))
        w = jax.random.uniform(kw, (fan_in, fan_out), jnp.float32, -bound, bound)
        b = jax.random.uniform(kb, (1, fan_out), jnp.float32, -bound, bound)
        return w, b

    k1, k2, k3, k4 = jax.random.split(key, 4)
    w1, b1 = linear(k1, INPUT_DIM, END_LAYER)
    w2, b2 = linear(k2, END_LAYER, MID_LAYER)
    w3, b3 = linear(k3, MID_LAYER, END_LAYER)
    w4, b4 = linear(k4, END_LAYER, INPUT_DIM)
    return (w1, b1, w2, b2, w3, b3, w4, b4)


def reference_forward(x, params):
    w1, b1, w2, b2, w3, b3, w4, b4 = params
    h = jax.nn.relu(x @ w1 + b1)
    h = jax.nn.relu(h @ w2 + b2)
    h = jax.nn.relu(h @ w3 + b3)
    return jax.nn.sigmoid(h @ w4 + b4)


if __name__ == "__main__":
    key = jax.random.PRNGKey(0)
    kx, kp = jax.random.split(key)

    batch = 64
    x = jax.random.normal(kx, (batch, INPUT_DIM), jnp.float32)
    raw_params = init_params(kp)

    # One-time weight prep (padding + bf16 cast) outside the forward call.
    params = prepare_params(raw_params)
    params = jax.block_until_ready(params)

    # block_b=32 -> bb=32, grid=(2,): exercises multiple grid steps / both v7x cores.
    out = autoencoder_forward(x, params, block_b=32)
    out = jax.block_until_ready(out)

    ref = reference_forward(x, raw_params)  # f32 reference
    assert out.shape == (batch, INPUT_DIM)
    # bf16 matmul operands (f32 accumulation) -> bf16-appropriate tolerance.
    assert jnp.allclose(out, ref, atol=2e-2, rtol=2e-2), float(jnp.max(jnp.abs(out - ref)))

    print("KERNEL_OK")
</pallas_src>

<mosaic_0001>
module attributes {stable_mosaic.version = 11 : i64} {
  func.func @autoencoder_kernel(%arg0: i32, %arg1: memref<32x784xf32, #tpu.memory_space<vmem>>, %arg2: memref<784x256xbf16, #tpu.memory_space<vmem>>, %arg3: memref<1x256xf32, #tpu.memory_space<vmem>>, %arg4: memref<256x128xbf16, #tpu.memory_space<vmem>>, %arg5: memref<1x128xf32, #tpu.memory_space<vmem>>, %arg6: memref<128x256xbf16, #tpu.memory_space<vmem>>, %arg7: memref<1x256xf32, #tpu.memory_space<vmem>>, %arg8: memref<256x784xbf16, #tpu.memory_space<vmem>>, %arg9: memref<1x784xf32, #tpu.memory_space<vmem>>, %arg10: memref<32x784xf32, #tpu.memory_space<vmem>>) attributes {dimension_semantics = [#tpu.dimension_semantics<parallel>], iteration_bounds = array<i64: 2>, scalar_prefetch = 0 : i64, scratch_operands = 0 : i64, tpu.core_type = #tpu.core_type<tc>, window_params = [{transform_indices = @transform_0, window_bounds = array<i64: 32, 784>}, {pipeline_mode = #tpu.pipeline_mode<synchronous>, transform_indices = @transform_1, window_bounds = array<i64: 784, 256>}, {pipeline_mode = #tpu.pipeline_mode<synchronous>, transform_indices = @transform_2, window_bounds = array<i64: 1, 256>}, {pipeline_mode = #tpu.pipeline_mode<synchronous>, transform_indices = @transform_3, window_bounds = array<i64: 256, 128>}, {pipeline_mode = #tpu.pipeline_mode<synchronous>, transform_indices = @transform_4, window_bounds = array<i64: 1, 128>}, {pipeline_mode = #tpu.pipeline_mode<synchronous>, transform_indices = @transform_5, window_bounds = array<i64: 128, 256>}, {pipeline_mode = #tpu.pipeline_mode<synchronous>, transform_indices = @transform_6, window_bounds = array<i64: 1, 256>}, {pipeline_mode = #tpu.pipeline_mode<synchronous>, transform_indices = @transform_7, window_bounds = array<i64: 256, 784>}, {pipeline_mode = #tpu.pipeline_mode<synchronous>, transform_indices = @transform_8, window_bounds = array<i64: 1, 784>}, {transform_indices = @transform_9, window_bounds = array<i64: 32, 784>}]} {
    %c0 = arith.constant 0 : index
    %c0_0 = arith.constant 0 : index
    %0 = vector.load %arg1[%c0, %c0_0] : memref<32x784xf32, #tpu.memory_space<vmem>>, vector<32x784xf32>
    %1 = arith.truncf %0 : vector<32x784xf32> to vector<32x784xbf16>
    %c0_1 = arith.constant 0 : index
    %c0_2 = arith.constant 0 : index
    %2 = vector.load %arg2[%c0_1, %c0_2] : memref<784x256xbf16, #tpu.memory_space<vmem>>, vector<784x256xbf16>
    %cst = arith.constant dense<0.000000e+00> : vector<32x256xf32>
    %3 = tpu.matmul %1, %2, %cst {dimension_numbers = #tpu.dot_dimension_numbers<[1], [0], [0], [1], [0, 0, 1, 1], [], []>} : vector<32x784xbf16>, vector<784x256xbf16>, vector<32x256xf32> -> vector<32x256xf32>
    %c0_3 = arith.constant 0 : index
    %c0_4 = arith.constant 0 : index
    %4 = vector.load %arg3[%c0_3, %c0_4] : memref<1x256xf32, #tpu.memory_space<vmem>>, vector<1x256xf32>
    %5 = vector.broadcast %4 : vector<1x256xf32> to vector<32x256xf32>
    %6 = arith.addf %3, %5 : vector<32x256xf32>
    %cst_5 = arith.constant 0.000000e+00 : f32
    %7 = vector.broadcast %cst_5 : f32 to vector<32x256xf32>
    %8 = arith.maximumf %6, %7 : vector<32x256xf32>
    %9 = arith.truncf %8 : vector<32x256xf32> to vector<32x256xbf16>
    %c0_6 = arith.constant 0 : index
    %c0_7 = arith.constant 0 : index
    %10 = vector.load %arg4[%c0_6, %c0_7] : memref<256x128xbf16, #tpu.memory_space<vmem>>, vector<256x128xbf16>
    %cst_8 = arith.constant dense<0.000000e+00> : vector<32x128xf32>
    %11 = tpu.matmul %9, %10, %cst_8 {dimension_numbers = #tpu.dot_dimension_numbers<[1], [0], [0], [1], [0, 0, 1, 1], [], []>} : vector<32x256xbf16>, vector<256x128xbf16>, vector<32x128xf32> -> vector<32x128xf32>
    %c0_9 = arith.constant 0 : index
    %c0_10 = arith.constant 0 : index
    %12 = vector.load %arg5[%c0_9, %c0_10] : memref<1x128xf32, #tpu.memory_space<vmem>>, vector<1x128xf32>
    %13 = vector.broadcast %12 : vector<1x128xf32> to vector<32x128xf32>
    %14 = arith.addf %11, %13 : vector<32x128xf32>
    %cst_11 = arith.constant 0.000000e+00 : f32
    %15 = vector.broadcast %cst_11 : f32 to vector<32x128xf32>
    %16 = arith.maximumf %14, %15 : vector<32x128xf32>
    %17 = arith.truncf %16 : vector<32x128xf32> to vector<32x128xbf16>
    %c0_12 = arith.constant 0 : index
    %c0_13 = arith.constant 0 : index
    %18 = vector.load %arg6[%c0_12, %c0_13] : memref<128x256xbf16, #tpu.memory_space<vmem>>, vector<128x256xbf16>
    %cst_14 = arith.constant dense<0.000000e+00> : vector<32x256xf32>
    %19 = tpu.matmul %17, %18, %cst_14 {dimension_numbers = #tpu.dot_dimension_numbers<[1], [0], [0], [1], [0, 0, 1, 1], [], []>} : vector<32x128xbf16>, vector<128x256xbf16>, vector<32x256xf32> -> vector<32x256xf32>
    %c0_15 = arith.constant 0 : index
    %c0_16 = arith.constant 0 : index
    %20 = vector.load %arg7[%c0_15, %c0_16] : memref<1x256xf32, #tpu.memory_space<vmem>>, vector<1x256xf32>
    %21 = vector.broadcast %20 : vector<1x256xf32> to vector<32x256xf32>
    %22 = arith.addf %19, %21 : vector<32x256xf32>
    %cst_17 = arith.constant 0.000000e+00 : f32
    %23 = vector.broadcast %cst_17 : f32 to vector<32x256xf32>
    %24 = arith.maximumf %22, %23 : vector<32x256xf32>
    %25 = arith.truncf %24 : vector<32x256xf32> to vector<32x256xbf16>
    %c0_18 = arith.constant 0 : index
    %c0_19 = arith.constant 0 : index
    %26 = vector.load %arg8[%c0_18, %c0_19] : memref<256x784xbf16, #tpu.memory_space<vmem>>, vector<256x784xbf16>
    %cst_20 = arith.constant dense<0.000000e+00> : vector<32x784xf32>
    %27 = tpu.matmul %25, %26, %cst_20 {dimension_numbers = #tpu.dot_dimension_numbers<[1], [0], [0], [1], [0, 0, 1, 1], [], []>} : vector<32x256xbf16>, vector<256x784xbf16>, vector<32x784xf32> -> vector<32x784xf32>
    %c0_21 = arith.constant 0 : index
    %c0_22 = arith.constant 0 : index
    %28 = vector.load %arg9[%c0_21, %c0_22] : memref<1x784xf32, #tpu.memory_space<vmem>>, vector<1x784xf32>
    %29 = vector.broadcast %28 : vector<1x784xf32> to vector<32x784xf32>
    %30 = arith.addf %27, %29 : vector<32x784xf32>
    %31 = arith.negf %30 : vector<32x784xf32>
    %32 = math.exp %31 : vector<32x784xf32>
    %cst_23 = arith.constant 1.000000e+00 : f32
    %33 = vector.broadcast %cst_23 : f32 to vector<32x784xf32>
    %34 = arith.addf %33, %32 : vector<32x784xf32>
    %35 = arith.divf %33, %34 : vector<32x784xf32>
    %c0_24 = arith.constant 0 : index
    %c0_25 = arith.constant 0 : index
    %36 = vector.load %arg10[%c0_24, %c0_25] : memref<32x784xf32, #tpu.memory_space<vmem>>, vector<32x784xf32>
    tpu.vector_store %arg10[%c0_24, %c0_25], %35 {strides = array<i32>} : memref<32x784xf32, #tpu.memory_space<vmem>>, vector<32x784xf32>,
    return
  }
  func.func @transform_0(%arg0: i32) -> (i32, i32) {
    %c0_i32 = arith.constant 0 : i32
    %c0_i32_0 = arith.constant 0 : i32
    return %arg0, %c0_i32 : i32, i32
  }
  func.func @transform_1(%arg0: i32) -> (i32, i32) {
    %c0_i32 = arith.constant 0 : i32
    %c0_i32_0 = arith.constant 0 : i32
    %c0_i32_1 = arith.constant 0 : i32
    return %c0_i32, %c0_i32_0 : i32, i32
  }
  func.func @transform_2(%arg0: i32) -> (i32, i32) {
    %c0_i32 = arith.constant 0 : i32
    %c0_i32_0 = arith.constant 0 : i32
    %c0_i32_1 = arith.constant 0 : i32
    return %c0_i32, %c0_i32_0 : i32, i32
  }
  func.func @transform_3(%arg0: i32) -> (i32, i32) {
    %c0_i32 = arith.constant 0 : i32
    %c0_i32_0 = arith.constant 0 : i32
    %c0_i32_1 = arith.constant 0 : i32
    return %c0_i32, %c0_i32_0 : i32, i32
  }
  func.func @transform_4(%arg0: i32) -> (i32, i32) {
    %c0_i32 = arith.constant 0 : i32
    %c0_i32_0 = arith.constant 0 : i32
    %c0_i32_1 = arith.constant 0 : i32
    return %c0_i32, %c0_i32_0 : i32, i32
  }
  func.func @transform_5(%arg0: i32) -> (i32, i32) {
    %c0_i32 = arith.constant 0 : i32
    %c0_i32_0 = arith.constant 0 : i32
    %c0_i32_1 = arith.constant 0 : i32
    return %c0_i32, %c0_i32_0 : i32, i32
  }
  func.func @transform_6(%arg0: i32) -> (i32, i32) {
    %c0_i32 = arith.constant 0 : i32
    %c0_i32_0 = arith.constant 0 : i32
    %c0_i32_1 = arith.constant 0 : i32
    return %c0_i32, %c0_i32_0 : i32, i32
  }
  func.func @transform_7(%arg0: i32) -> (i32, i32) {
    %c0_i32 = arith.constant 0 : i32
    %c0_i32_0 = arith.constant 0 : i32
    %c0_i32_1 = arith.constant 0 : i32
    return %c0_i32, %c0_i32_0 : i32, i32
  }
  func.func @transform_8(%arg0: i32) -> (i32, i32) {
    %c0_i32 = arith.constant 0 : i32
    %c0_i32_0 = arith.constant 0 : i32
    %c0_i32_1 = arith.constant 0 : i32
    return %c0_i32, %c0_i32_0 : i32, i32
  }
  func.func @transform_9(%arg0: i32) -> (i32, i32) {
    %c0_i32 = arith.constant 0 : i32
    %c0_i32_0 = arith.constant 0 : i32
    return %arg0, %c0_i32 : i32, i32
  }
}

</mosaic_0001>

<bundles_post_ra>
// kernel: autoencoder_forward.1
= control target key start
LH: loop header
LB: loop body
LE: loop exit
PB: predicated region body
PF: predicated region fallthrough
CT: control target
= control target key end

     0   :  { %14 = vsyncpa [#allocation3], 0  ;;  %s4757_s0 = inlined_call_operand.vmem [shape: f32[64,784], index: 0, kind: input, shape index: {}]   ;;  %s4758_s1 = inlined_call_operand.vmem [shape: bf16[784,256], index: 1, kind: input, shape index: {}]   ;;  %s4759_s2 = inlined_call_operand.vmem [shape: f32[1,256], index: 2, kind: input, shape index: {}]   ;;  %s4760_s3 = inlined_call_operand.vmem [shape: bf16[256,128], index: 3, kind: input, shape index: {}]   ;;  %s4761_s4 = inlined_call_operand.vmem [shape: f32[1,128], index: 4, kind: input, shape index: {}]   ;;  %s4762_s5 = inlined_call_operand.vmem [shape: bf16[128,256], index: 5, kind: input, shape index: {}]   ;;  %s4763_s6 = inlined_call_operand.vmem [shape: f32[1,256], index: 6, kind: input, shape index: {}]   ;;  %s4764_s7 = inlined_call_operand.vmem [shape: bf16[256,784], index: 7, kind: input, shape index: {}]   ;;  %s4765_s8 = inlined_call_operand.vmem [shape: f32[1,784], index: 8, kind: input, shape index: {}]   ;;  %s4766_s9 = inlined_call_operand.hbm [shape: f32[64,784], index: 9, kind: output, shape index: {}]  }
   0x1   :  { %16 = vsyncpa [#allocation3 + $0x1], 0  ;;  %s3790_s30 = smov 0   ;;  %s3792_s10 = smov 0  }
   0x2   :  { %s3794_s11 = smov 0   ;;  %s3796_s12 = smov 0  }
   0x3 LB: > { %s3811_s13 = sadd.s32 4294967295, %s3734_s12   ;;  %s2796_s14 = sadd.s32 4294967294, %s3734_s12   ;;  %s3734_s12 = sphi %s3796_s12, %s4772_s12   ;;  %s3730_s11 = sphi %s3794_s11, %s4771_s11   ;;  %s3726_s10 = sphi %s3792_s10, %s4770_s10   ;;  %s3722_s30 = sphi %s3790_s30, %s4769_s30  }
   0x4   : > { %s3815_s15 = sadd.s32 1, %s3734_s12   ;;  %s223_s16 = sadd.s32 1, %s3730_s11 }
   0x5   : > { %s220_s17 = ssub.s32 %s3734_s12, %s3815_s15  ;;  %p233_p0 = scmp.ne.s32.totalorder %s3730_s11, %s3726_s10 }
   0x6   : > { %p221_p1 = scmp.eq.s32.totalorder %s220_s17, 0  ;;  %p234_p2 = scmp.eq.s32.totalorder %s3811_s13, 1 }
   0x7   : > { %p239_p3 = scmp.ne.s32.totalorder %s3726_s10, %s3722_s30  ;;  %p240_p4 = scmp.eq.s32.totalorder %s2796_s14, 1 }
   0x8   : > { %s3826_s18 = scalar_select %p221_p1, %s3730_s11, %s223_s16  }
   0x9   : > { %p3828_p5 = por %p234_p2, %p233_p0  ;;  %p3832_p6 = por %p240_p4, %p239_p3 }
   0xa   : > { %p2799_p7 = scmp.ge.s32.totalorder %s3734_s12, 1  ;;  %p292_p8 = scmp.lt.s32.totalorder %s3734_s12, 3 }
   0xc   : > { %p293_p9 = pnand %p2799_p7, %p292_p8 }
   0xd   : > { %v3213_v0 = vld [vmem:[%s4758_s1 + $0x4] ss:$8 sps:$4 sm:$0xff] (!%p293_p9)   ;;  %v3215_v1 = vld [vmem:[%s4758_s1] ss:$8 sps:$4 sm:$0xff] (!%p293_p9)   ;;  %v3216_v2 = vld [vmem:[%s4758_s1 + $0x14] ss:$8 sps:$4 sm:$0xff] (!%p293_p9)  }
   0xe   : > { %296 = sbr.rel (%p293_p9) target bundleno = 1283 (0x503), region = 56  ;;  %987 = vmatprep.subr.bf16.mxu0 (!%p293_p9), %v3213_v0  ;;  %v3218_v3 = vld [vmem:[%s4758_s1 + $0x10] ss:$8 sps:$4 sm:$0xff] (!%p293_p9)   ;;  %s2800_s29 = sshll.u32 (!%p293_p9), %s3811_s13, 2  ;;  %v3219_v4 = vld [vmem:[%s4758_s1 + $0x24] ss:$8 sps:$4 sm:$0xff] (!%p293_p9)  }
   0xf   : > { %988 = vmatpush1.bf16.msra.mxu0 (!%p293_p9), %v3215_v1  ;;  %p330_p10 = scmp.lt.s32.totalorder (!%p293_p9), %s2800_s29, 7  ;;  %v3221_v5 = vld [vmem:[%s4758_s1 + $0x20] ss:$8 sps:$4 sm:$0xff] (!%p293_p9)   ;;  %v3222_v6 = vld [vmem:[%s4758_s1 + $0x34] ss:$8 sps:$4 sm:$0xff] (!%p293_p9)   ;;  %vm980_vm0 = vcmask (!%p293_p9), 130048  }
  0x10   : > { %989 = vmatprep.subr.bf16.mxu0 (!%p293_p9), %v3216_v2  ;;  %v3224_v7 = vld [vmem:[%s4758_s1 + $0x30] ss:$8 sps:$4 sm:$0xff] (!%p293_p9)   ;;  %v3225_v8 = vld [vmem:[%s4758_s1 + $0x44] ss:$8 sps:$4 sm:$0xff] (!%p293_p9)   ;;  %v3227_v9 = vld [vmem:[%s4758_s1 + $0x40] ss:$8 sps:$4 sm:$0xff] (!%p293_p9)  }
  0x11   : > { %v3228_v10 = vld [vmem:[%s4758_s1 + $0x54] ss:$8 sps:$4 sm:$0xff] (!%p293_p9)   ;;  %v3230_v11 = vld [vmem:[%s4758_s1 + $0x50] ss:$8 sps:$4 sm:$0xff] (!%p293_p9)   ;;  %v3231_v12 = vld [vmem:[%s4758_s1 + $0x64] ss:$8 sps:$4 sm:$0xff] (!%p293_p9)  }
  0x12   : > { %v3233_v16 = vld [vmem:[%s4758_s1 + $0x60] ss:$8 sps:$4 sm:$0xff] (!%p293_p9)   ;;  %v3234_v17 = vld [vmem:[%s4758_s1 + $0x74] ss:$8 sps:$4 sm:$0xff] (!%p293_p9)   ;;  %v3236_v18 = vld [vmem:[%s4758_s1 + $0x70] ss:$8 sps:$4 sm:$0xff] (!%p293_p9)  }
  0x13   : > { %990 = vmatpush1.bf16.msra.mxu0 (!%p293_p9), %v3218_v3  ;;  %v3237_v19 = vld [vmem:[%s4758_s1 + $0x84] ss:$8 sps:$4 sm:$0xff] (!%p293_p9)   ;;  %v3239_v20 = vld [vmem:[%s4758_s1 + $0x80] ss:$8 sps:$4 sm:$0xff] (!%p293_p9)   ;;  %v3240_v21 = vld [vmem:[%s4758_s1 + $0x94] ss:$8 sps:$4 sm:$0xff] (!%p293_p9)  }
  0x14   : > { %991 = vmatprep.subr.bf16.mxu0 (!%p293_p9), %v3219_v4  ;;  %v3242_v22 = vld [vmem:[%s4758_s1 + $0x90] ss:$8 sps:$4 sm:$0xff] (!%p293_p9)   ;;  %v3243_v23 = vld [vmem:[%s4758_s1 + $0xa4] ss:$8 sps:$4 sm:$0xff] (!%p293_p9)   ;;  %v3245_v24 = vld [vmem:[%s4758_s1 + $0xa0] ss:$8 sps:$4 sm:$0xff] (!%p293_p9)  }
  0x15   : > { %s4774_s29 = smov (!%p330_p10, %s2800_s29), 7  ;;  %v3246_v25 = vld [vmem:[%s4758_s1 + $0xb4] ss:$8 sps:$4 sm:$0xff]   ;;  %v3248_v26 = vld [vmem:[%s4758_s1 + $0xb0] ss:$8 sps:$4 sm:$0xff]   ;;  %v3360_v62 = vld [vmem:[%s4760_s3 + $0x40] sm:$0xff]  }
  0x16   : > { %s3169_s28 = smul.u32 56, %s4774_s29  ;;  %v3249_v27 = vld [vmem:[%s4758_s1 + $0xc4] ss:$8 sps:$4 sm:$0xff]   ;;  %v3251_v28 = vld [vmem:[%s4758_s1 + $0xc0] ss:$8 sps:$4 sm:$0xff]   ;;  %3080 = vmatprep.subr.bf16.mxu1 %v3360_v62  ;;  %s326_s17 = sand.u32 1, %s3726_s10  }
  0x17   : > { %992 = vmatpush1.bf16.msra.mxu0 %v3221_v5  ;;  %v3252_v29 = vld [vmem:[%s4758_s1 + $0xd4] ss:$8 sps:$4 sm:$0xff]   ;;  %v3254_v30 = vld [vmem:[%s4758_s1 + $0xd0] ss:$8 sps:$4 sm:$0xff]   ;;  %v3255_v31 = vld [vmem:[%s4758_s1 + $0xe4] ss:$8 sps:$4 sm:$0xff]  }
  0x18   : > { %993 = vmatprep.subr.bf16.mxu0 %v3222_v6  ;;  %s3875_s24 = scalar_lea.vmem %s4757_s0, %s3169_s28  ;;  %v3257_v32 = vld [vmem:[%s4758_s1 + $0xe0] ss:$8 sps:$4 sm:$0xff]   ;;  %v3258_v33 = vld [vmem:[%s4758_s1 + $0xf4] ss:$8 sps:$4 sm:$0xff]   ;;  %v3260_v34 = vld [vmem:[%s4758_s1 + $0xf0] ss:$8 sps:$4 sm:$0xff]  }
  0x19   : > { %v339_v13 = vld [vmem:[%s3875_s24 + $0x8] sm:$0xff]  ;;  %v346_v14 = vld [vmem:[%s3875_s24 + $0x40] sm:$0xff]  ;;  %v345_v37 = vld [vmem:[%s3875_s24 + $0x38] sm:$0xff]  ;;  %s3168_s21 = smul.u32 224, %s326_s17 }
  0x1a   : > { %v367_v15 = vpack.c.bf16 %v346_v14, %v339_v13  ;;  %v3263_v35 = vld [vmem:[%s4758_s1 + $0x104] ss:$8 sps:$4 sm:$0xff]   ;;  %v353_v38 = vld [vmem:[%s3875_s24 + $0x78] sm:$0xff]  ;;  %v360_v39 = vld [vmem:[%s3875_s24 + $0xb0] sm:$0xff]  ;;  %s3170_s23 = smul.u32 3584, %s3811_s13  ;;  %s4716_s13 = scalar_lea.sflag [#allocation3], %s326_s17 }
  0x1b   : > { %994 = vmatpush1.bf16.msra.mxu0 %v3224_v7  ;;  %v338_v36 = vld [vmem:[%s3875_s24] sm:$0xff]  ;;  %v374_v42 = vpack.c.bf16 %v360_v39, %v353_v38  ;;  %v3266_v43 = vld [vmem:[%s4758_s1 + $0x114] ss:$8 sps:$4 sm:$0xff]   ;;  %v3264_v44 = vld [vmem:[%s4758_s1 + $0x110] ss:$8 sps:$4 sm:$0xff]   ;;  %s4663_s22 = scalar_lea.vmem [#allocation2], %s3168_s21 }
  0x1c   : > { %995 = vmatprep.subr.bf16.mxu0 %v3225_v8  ;;  %1019 = vmatprep.mubr.bf16.mxu0 %v367_v15  ;;  %v366_v40 = vpack.c.bf16 %v345_v37, %v338_v36  ;;  %v3261_v41 = vld [vmem:[%s4758_s1 + $0x100] ss:$8 sps:$4 sm:$0xff]   ;;  %v3269_v45 = vld [vmem:[%s4758_s1 + $0x124] ss:$8 sps:$4 sm:$0xff]   ;;  %v352_v46 = vld [vmem:[%s3875_s24 + $0x70] sm:$0xff]  ;;  %s2734_s25 = sshll.u32 %s4663_s22, 4  ;;  %s4710_s27 = scalar_lea.hbm %s4766_s9, %s3170_s23  ;;  %s4704_s25 = int_to_ptr.vmem [resolvable:$true] %s2734_s25 }
  0x1d   : > { %v359_v47 = vld [vmem:[%s3875_s24 + $0xa8] sm:$0xff]  ;;  %v341_v48 = vld [vmem:[%s3875_s24 + $0x18] sm:$0xff]  ;;  %v348_v49 = vld [vmem:[%s3875_s24 + $0x50] sm:$0xff]  ;;  %s3672_s14 = scalar_lea.vmem %s4704_s25, 3584 }
  0x1e   : > { %v373_v50 = vpack.c.bf16 %v359_v47, %v352_v46  ;;  %v3267_v51 = vld [vmem:[%s4758_s1 + $0x120] ss:$8 sps:$4 sm:$0xff]   ;;  %v369_v52 = vpack.c.bf16 %v348_v49, %v341_v48  ;;  %v3272_v53 = vld [vmem:[%s4758_s1 + $0x134] ss:$8 sps:$4 sm:$0xff]   ;;  %v3270_v54 = vld [vmem:[%s4758_s1 + $0x130] ss:$8 sps:$4 sm:$0xff]   ;;  %p3673_p11 = scmp.ne.s32.totalorder %s4704_s25, %s3672_s14 }
  0x1f   : > { %996 = vmatpush1.bf16.msra.mxu0 %v3227_v9  ;;  %v3275_v55 = vld [vmem:[%s4758_s1 + $0x144] ss:$8 sps:$4 sm:$0xff]   ;;  %v3273_v56 = vld [vmem:[%s4758_s1 + $0x140] ss:$8 sps:$4 sm:$0xff]   ;;  %v3278_v57 = vld [vmem:[%s4758_s1 + $0x154] ss:$8 sps:$4 sm:$0xff]  }
  0x20   : > { %997 = vmatprep.subr.bf16.mxu0 %v3228_v10  ;;  %v3276_v58 = vld [vmem:[%s4758_s1 + $0x150] ss:$8 sps:$4 sm:$0xff]   ;;  %v3281_v59 = vld [vmem:[%s4758_s1 + $0x164] ss:$8 sps:$4 sm:$0xff]   ;;  %v3279_v60 = vld [vmem:[%s4758_s1 + $0x160] ss:$8 sps:$4 sm:$0xff]   ;;  %p3674_p12 = pnand %p3673_p11, %p3828_p5 }
  0x21   : > { %v3284_v61 = vld [vmem:[%s4758_s1 + $0x174] ss:$8 sps:$4 sm:$0xff]   ;;  %v3361_v63 = vld [vmem:[%s4760_s3] sm:$0xff]   ;;  %v3362_v0 = vld [vmem:[%s4760_s3 + $0x48] sm:$0xff]  }
  0x22   : > { %v3282_v1 = vld [vmem:[%s4758_s1 + $0x170] ss:$8 sps:$4 sm:$0xff]   ;;  %v3287_v2 = vld [vmem:[%s4758_s1 + $0x184] ss:$8 sps:$4 sm:$0xff]   ;;  %v3285_v3 = vld [vmem:[%s4758_s1 + $0x180] ss:$8 sps:$4 sm:$0xff]   ;;  %3081 = vmatpush3.bf16.msra.mxu1 %v3361_v63  ;;  %p3675_p13 = pneg %p3674_p12 }
  0x23   : > { %998 = vmatpush1.bf16.msra.mxu0 %v3230_v11  ;;  %v3363_v4 = vld [vmem:[%s4760_s3 + $0x8] sm:$0xff]   ;;  %v3364_v5 = vld [vmem:[%s4760_s3 + $0x50] sm:$0xff]   ;;  %3082 = vmatprep.subr.bf16.mxu1 %v3362_v0  ;;  %v3366_v8 = vld [vmem:[%s4760_s3 + $0x58] sm:$0xff]  }
  0x24   : > { %999 = vmatprep.subr.bf16.mxu0 %v3231_v12  ;;  %v3290_v6 = vld [vmem:[%s4758_s1 + $0x194] ss:$8 sps:$4 sm:$0xff]   ;;  %v3288_v9 = vld [vmem:[%s4758_s1 + $0x190] ss:$8 sps:$4 sm:$0xff]   ;;  %v3293_v10 = vld [vmem:[%s4758_s1 + $0x1a4] ss:$8 sps:$4 sm:$0xff]  }
  0x25   : > { %v3365_v7 = vld [vmem:[%s4760_s3 + $0x10] sm:$0xff]   ;;  %v3367_v11 = vld [vmem:[%s4760_s3 + $0x18] sm:$0xff]   ;;  %v3368_v12 = vld [vmem:[%s4760_s3 + $0x60] sm:$0xff]  }
  0x26   : > { %3083 = vmatpush3.bf16.msra.mxu1 %v3363_v4  ;;  %v3291_v13 = vld [vmem:[%s4758_s1 + $0x1a0] ss:$8 sps:$4 sm:$0xff]   ;;  %v3296_v14 = vld [vmem:[%s4758_s1 + $0x1b4] ss:$8 sps:$4 sm:$0xff]   ;;  %v3317_v38 = vld [vmem:[%s4758_s1 + $0x224] ss:$8 sps:$4 sm:$0xff]  }
  0x27   : > { %1000 = vmatpush1.bf16.msra.mxu0 %v3233_v16  ;;  %3084 = vmatprep.subr.bf16.mxu1 %v3364_v5  ;;  %v3369_v15 = vld [vmem:[%s4760_s3 + $0x20] sm:$0xff]   ;;  %v3370_v16 = vld [vmem:[%s4760_s3 + $0x68] sm:$0xff]   ;;  %v361_v37 = vld [vmem:[%s3875_s24 + $0xb8] sm:$0xff] }
  0x28   : > { %1001 = vmatprep.subr.bf16.mxu0 %v3234_v17  ;;  %v3294_v17 = vld [vmem:[%s4758_s1 + $0x1b0] ss:$8 sps:$4 sm:$0xff]   ;;  %v354_v36 = vld [vmem:[%s3875_s24 + $0x80] sm:$0xff]  ;;  %v343_v39 = vld [vmem:[%s3875_s24 + $0x28] sm:$0xff] }
  0x29   : > { %v3323_v46 = vld [vmem:[%s4758_s1 + $0x244] ss:$8 sps:$4 sm:$0xff]   ;;  %v3321_v47 = vld [vmem:[%s4758_s1 + $0x240] ss:$8 sps:$4 sm:$0xff]   ;;  %v3326_v48 = vld [vmem:[%s4758_s1 + $0x254] ss:$8 sps:$4 sm:$0xff]  }
  0x2a   : > { %3085 = vmatpush3.bf16.msra.mxu1 %v3365_v7  ;;  %v3324_v49 = vld [vmem:[%s4758_s1 + $0x250] ss:$8 sps:$4 sm:$0xff]   ;;  %v3347_v62 = vld [vmem:[%s4758_s1 + $0x2c4] ss:$8 sps:$4 sm:$0xff]   ;;  %v3345_v63 = vld [vmem:[%s4758_s1 + $0x2c0] ss:$8 sps:$4 sm:$0xff]  }
  0x2b   : > { %1002 = vmatpush1.bf16.msra.mxu0 %v3236_v18  ;;  %3086 = vmatprep.subr.bf16.mxu1 %v3366_v8  ;;  %v3299_v18 = vld [vmem:[%s4758_s1 + $0x1c4] ss:$8 sps:$4 sm:$0xff]   ;;  %v3350_v0 = vld [vmem:[%s4758_s1 + $0x2d4] ss:$8 sps:$4 sm:$0xff]   ;;  %v3354_v5 = vld [vmem:[%s4758_s1 + $0x2f0] ss:$8 sps:$4 sm:$0xff]  }
  0x2c   : > { %1003 = vmatprep.subr.bf16.mxu0 %v3237_v19  ;;  %v3297_v19 = vld [vmem:[%s4758_s1 + $0x1c0] ss:$8 sps:$4 sm:$0xff]   ;;  %v3356_v4 = vld [vmem:[%s4758_s1 + $0x2f4] ss:$8 sps:$4 sm:$0xff]   ;;  %v3359_v8 = vld [vmem:[%s4758_s1 + $0x304] ss:$8 sps:$4 sm:$0xff]  }
  0x2d   : > { %v349_v7 = vld [vmem:[%s3875_s24 + $0x58] sm:$0xff] }
  0x2e   : > { %3087 = vmatpush3.bf16.msra.mxu1 %v3367_v11 }
  0x2f   : > { %1004 = vmatpush1.bf16.msra.mxu0 %v3239_v20  ;;  %3088 = vmatprep.subr.bf16.mxu1 %v3368_v12  ;;  %v3302_v20 = vld [vmem:[%s4758_s1 + $0x1d4] ss:$8 sps:$4 sm:$0xff]   ;;  %v3357_v12 = vld [vmem:[%s4758_s1 + $0x300] ss:$8 sps:$4 sm:$0xff]  }
  0x30   : > { %1005 = vmatprep.subr.bf16.mxu0 %v3240_v21  ;;  %v3300_v21 = vld [vmem:[%s4758_s1 + $0x1d0] ss:$8 sps:$4 sm:$0xff]  }
  0x32   : > { %3089 = vmatpush3.bf16.msra.mxu1 %v3369_v15  ;;  %v363_v15 = vld [vmem:[%s3875_s24 + $0xc8] sm:$0xff] }
  0x33   : > { %1006 = vmatpush1.bf16.msra.mxu0 %v3242_v22  ;;  %3090 = vmatprep.subr.bf16.mxu1 %v3370_v16  ;;  %v3305_v22 = vld [vmem:[%s4758_s1 + $0x1e4] ss:$8 sps:$4 sm:$0xff]  }
  0x34   : > { %1007 = vmatprep.subr.bf16.mxu0 %v3243_v23  ;;  %v3303_v23 = vld [vmem:[%s4758_s1 + $0x1e0] ss:$8 sps:$4 sm:$0xff]  }
  0x37   : > { %1008 = vmatpush1.bf16.msra.mxu0 %v3245_v24  ;;  %v3308_v24 = vld [vmem:[%s4758_s1 + $0x1f4] ss:$8 sps:$4 sm:$0xff]  }
  0x38   : > { %1009 = vmatprep.subr.bf16.mxu0 %v3246_v25  ;;  %v3306_v25 = vld [vmem:[%s4758_s1 + $0x1f0] ss:$8 sps:$4 sm:$0xff]  }
  0x3b   : > { %1010 = vmatpush1.bf16.msra.mxu0 %v3248_v26  ;;  %v340_v26 = vld [vmem:[%s3875_s24 + $0x10] sm:$0xff] }
  0x3c   : > { %1011 = vmatprep.subr.bf16.mxu0 %v3249_v27  ;;  %v347_v27 = vld [vmem:[%s3875_s24 + $0x48] sm:$0xff] }
  0x3f   : > { %1012 = vmatpush1.bf16.msra.mxu0 %v3251_v28  ;;  %v3311_v28 = vld [vmem:[%s4758_s1 + $0x204] ss:$8 sps:$4 sm:$0xff]  }
  0x40   : > { %1013 = vmatprep.subr.bf16.mxu0 %v3252_v29  ;;  %v355_v29 = vld [vmem:[%s3875_s24 + $0x88] sm:$0xff] }
  0x43   : > { %1014 = vmatpush1.bf16.msra.mxu0 %v3254_v30  ;;  %v362_v30 = vld [vmem:[%s3875_s24 + $0xc0] sm:$0xff] }
  0x44   : > { %1015 = vmatprep.subr.bf16.mxu0 %v3255_v31  ;;  %v3309_v31 = vld [vmem:[%s4758_s1 + $0x200] ss:$8 sps:$4 sm:$0xff]  }
  0x47   : > { %1016 = vmatpush1.bf16.msra.mxu0 %v3257_v32  ;;  %v368_v32 = vpack.c.bf16 %v347_v27, %v340_v26  ;;  %v3373_v26 = vld [vmem:[%s4760_s3 + $0x30] sm:$0xff]   ;;  %v3374_v27 = vld [vmem:[%s4760_s3 + $0x78] sm:$0xff]  }
  0x48   : > { %1017 = vmatprep.subr.bf16.mxu0 %v3258_v33  ;;  %v3314_v33 = vld [vmem:[%s4758_s1 + $0x214] ss:$8 sps:$4 sm:$0xff]  }
  0x4b   : > { %1018 = vmatpush1.bf16.msra.mxu0 %v3260_v34  ;;  %v376_v34 = vpack.c.bf16 %v362_v30, %v355_v29  ;;  %v3378_v29 = vld [vmem:[%s4762_s5 + $0x4] ss:$8 sps:$4 sm:$0xff]   ;;  %v480_v30 = vlaneseq }
  0x4c   : > { %1040 = vmatprep.subr.bf16.mxu0 %v3263_v35  ;;  %v3312_v35 = vld [vmem:[%s4758_s1 + $0x210] ss:$8 sps:$4 sm:$0xff]  }
  0x4e   : > { %1020 = vmatmul.mubr.bf16.vlgmr.msra.gmra.mrb[0].mxu0 %v366_v40  ;;  %v350_v40 = vld [vmem:[%s3875_s24 + $0x60] sm:$0xff] }
  0x4f   : > { %1041 = vmatpush1.bf16.msra.mxu0 %v3261_v41  ;;  %1029 = vmatprep.mubr.bf16.mxu0 %v374_v42  ;;  %v3315_v41 = vld [vmem:[%s4758_s1 + $0x220] ss:$8 sps:$4 sm:$0xff]   ;;  %v3320_v42 = vld [vmem:[%s4758_s1 + $0x234] ss:$8 sps:$4 sm:$0xff]  }
  0x50   : > { %1042 = vmatprep.subr.bf16.mxu0 %v3266_v43  ;;  %v375_v43 = vpack.c.bf16 %v361_v37, %v354_v36 }
  0x53   : > { %1043 = vmatpush1.bf16.msra.mxu0 %v3264_v44  ;;  %v371_v44 = vpack.c.bf16 %v350_v40, %v343_v39 }
  0x54   : > { %1044 = vmatprep.subr.bf16.mxu0 %v3269_v45  ;;  %v3318_v45 = vld [vmem:[%s4758_s1 + $0x230] ss:$8 sps:$4 sm:$0xff]  }
  0x56   : > { %1030 = vmatmul.mubr.bf16.gmra.mrb[4].mxu0 %v373_v50  ;;  %v3329_v50 = vld [vmem:[%s4758_s1 + $0x264] ss:$8 sps:$4 sm:$0xff]  }
  0x57   : > { %1045 = vmatpush1.bf16.msra.mxu0 %v3267_v51  ;;  %1072 = vmatprep.mubr.bf16.mxu0 %v369_v52  ;;  %v3327_v51 = vld [vmem:[%s4758_s1 + $0x260] ss:$8 sps:$4 sm:$0xff]   ;;  %v3332_v52 = vld [vmem:[%s4758_s1 + $0x274] ss:$8 sps:$4 sm:$0xff]  }
  0x58   : > { %1046 = vmatprep.subr.bf16.mxu0 %v3272_v53  ;;  %v3330_v53 = vld [vmem:[%s4758_s1 + $0x270] ss:$8 sps:$4 sm:$0xff]  }
  0x5b   : > { %1047 = vmatpush1.bf16.msra.mxu0 %v3270_v54  ;;  %v3335_v54 = vld [vmem:[%s4758_s1 + $0x284] ss:$8 sps:$4 sm:$0xff]  }
  0x5c   : > { %1048 = vmatprep.subr.bf16.mxu0 %v3275_v55  ;;  %v3333_v55 = vld [vmem:[%s4758_s1 + $0x280] ss:$8 sps:$4 sm:$0xff]  }
  0x5f   : > { %1049 = vmatpush1.bf16.msra.mxu0 %v3273_v56  ;;  %v3338_v56 = vld [vmem:[%s4758_s1 + $0x294] ss:$8 sps:$4 sm:$0xff]  }
  0x60   : > { %1050 = vmatprep.subr.bf16.mxu0 %v3278_v57  ;;  %v3336_v57 = vld [vmem:[%s4758_s1 + $0x290] ss:$8 sps:$4 sm:$0xff]  }
  0x63   : > { %1051 = vmatpush1.bf16.msra.mxu0 %v3276_v58  ;;  %v3341_v58 = vld [vmem:[%s4758_s1 + $0x2a4] ss:$8 sps:$4 sm:$0xff]  }
  0x64   : > { %1052 = vmatprep.subr.bf16.mxu0 %v3281_v59  ;;  %v3339_v59 = vld [vmem:[%s4758_s1 + $0x2a0] ss:$8 sps:$4 sm:$0xff]  }
  0x67   : > { %1053 = vmatpush1.bf16.msra.mxu0 %v3279_v60  ;;  %v3344_v60 = vld [vmem:[%s4758_s1 + $0x2b4] ss:$8 sps:$4 sm:$0xff]  }
  0x68   : > { %1054 = vmatprep.subr.bf16.mxu0 %v3284_v61  ;;  %v3342_v61 = vld [vmem:[%s4758_s1 + $0x2b0] ss:$8 sps:$4 sm:$0xff]  }
  0x6b   : > { %1055 = vmatpush1.bf16.msra.mxu0 %v3282_v1  ;;  %v3348_v1 = vld [vmem:[%s4758_s1 + $0x2d0] ss:$8 sps:$4 sm:$0xff]  }
  0x6c   : > { %1056 = vmatprep.subr.bf16.mxu0 %v3287_v2  ;;  %v3353_v2 = vld [vmem:[%s4758_s1 + $0x2e4] ss:$8 sps:$4 sm:$0xff]  }
  0x6f   : > { %1057 = vmatpush1.bf16.msra.mxu0 %v3285_v3  ;;  %v3351_v3 = vld [vmem:[%s4758_s1 + $0x2e0] ss:$8 sps:$4 sm:$0xff]  }
  0x70   : > { %1058 = vmatprep.subr.bf16.mxu0 %v3290_v6  ;;  %v342_v6 = vld [vmem:[%s3875_s24 + $0x20] sm:$0xff] }
  0x71   : > { %v370_v11 = vpack.c.bf16 %v349_v7, %v342_v6  ;;  %v3387_v6 = vld [vmem:[%s4762_s5 + $0x34] ss:$8 sps:$4 sm:$0xff]   ;;  %v3385_v7 = vld [vmem:[%s4762_s5 + $0x30] ss:$8 sps:$4 sm:$0xff]  }
  0x73   : > { %1059 = vmatpush1.bf16.msra.mxu0 %v3288_v9  ;;  %v357_v9 = vld [vmem:[%s3875_s24 + $0x98] sm:$0xff] }
  0x74   : > { %1060 = vmatprep.subr.bf16.mxu0 %v3293_v10  ;;  %v364_v10 = vld [vmem:[%s3875_s24 + $0xd0] sm:$0xff] }
  0x77   : > { %1061 = vmatpush1.bf16.msra.mxu0 %v3291_v13  ;;  %v378_v13 = vpack.c.bf16 %v364_v10, %v357_v9  ;;  %v3388_v9 = vld [vmem:[%s4762_s5 + $0x40] ss:$8 sps:$4 sm:$0xff]   ;;  %v3393_v10 = vld [vmem:[%s4762_s5 + $0x54] ss:$8 sps:$4 sm:$0xff]  }
  0x78   : > { %1062 = vmatprep.subr.bf16.mxu0 %v3296_v14  ;;  %v356_v14 = vld [vmem:[%s3875_s24 + $0x90] sm:$0xff] }
  0x79   : > { %v377_v16 = vpack.c.bf16 %v363_v15, %v356_v14  ;;  %v3399_v14 = vld [vmem:[%s4762_s5 + $0x74] ss:$8 sps:$4 sm:$0xff]   ;;  %v3397_v15 = vld [vmem:[%s4762_s5 + $0x70] ss:$8 sps:$4 sm:$0xff]  }
  0x7b   : > { %1063 = vmatpush1.bf16.msra.mxu0 %v3294_v17  ;;  %v3736_v17 = vmov 0  }
  0x7c   : > { %1064 = vmatprep.subr.bf16.mxu0 %v3299_v18  ;;  %v344_v18 = vld [vmem:[%s3875_s24 + $0x30] sm:$0xff] }
  0x7f   : > { %1065 = vmatpush1.bf16.msra.mxu0 %v3297_v19  ;;  %v351_v19 = vld [vmem:[%s3875_s24 + $0x68] sm:$0xff] }
  0x80   : > { %1066 = vmatprep.subr.bf16.mxu0 %v3302_v20  ;;  %v372_v20 = vpack.c.bf16 %v351_v19, %v344_v18  ;;  %v3427_v18 = vld [vmem:[%s4764_s7 + $0x1d8] ss:$28 sps:$4 sm:$0xff]  }
  0x81   : > { %v3428_v19 = vld [vmem:[%s4764_s7 + $0x18] ss:$28 sps:$4 sm:$0xff]  }
  0x83   : > { %1067 = vmatpush1.bf16.msra.mxu0 %v3300_v21  ;;  %v358_v21 = vld [vmem:[%s3875_s24 + $0xa0] sm:$0xff] }
  0x84   : > { %1068 = vmatprep.subr.bf16.mxu0 %v3305_v22  ;;  %v365_v22 = vld [vmem:[%s3875_s24 + $0xd8] sm:$0xff]  ;;  %s3737_s24 = smov [#allocation2]  }
  0x85   : > { %s3676_s16 = sshll.u32 %s3737_s24, 4  ;;  %s3677_s16 = int_to_ptr.vmem [resolvable:$false] %s3676_s16 }
  0x86   : > { %s3678_s28 = scalar_lea.vmem %s3677_s16, 7168  ;;  %p3679_p0 = scmp.lt.s32.totalorder %s4704_s25, %s3677_s16 }
  0x87   : > { %1069 = vmatpush1.bf16.msra.mxu0 %v3303_v23  ;;  %v379_v23 = vpack.c.bf16 %v365_v22, %v358_v21  ;;  %v3433_v21 = vld [vmem:[%s4764_s7 + $0x50] ss:$28 sps:$4 sm:$0xff]   ;;  %v3437_v22 = vld [vmem:[%s4764_s7 + $0x248] ss:$28 sps:$4 sm:$0xff]   ;;  %p3680_p1 = scmp.lt.s32.totalorder %s3678_s28, %s3672_s14 }
  0x88   : > { %1070 = vmatprep.subr.bf16.mxu0 %v3308_v24  ;;  %v3371_v24 = vld [vmem:[%s4760_s3 + $0x28] sm:$0xff]  }
  0x89   : > { %3091 = vmatpush3.bf16.msra.mxu1 %v3371_v24  ;;  %v3442_v24 = vld [vmem:[%s4764_s7 + $0x280] ss:$28 sps:$4 sm:$0xff]   ;;  %p3681_p2 = por %p3680_p1, %p3679_p0 }
  0x8b   : > { %1071 = vmatpush1.bf16.msra.mxu0 %v3306_v25  ;;  %v3372_v25 = vld [vmem:[%s4760_s3 + $0x70] sm:$0xff]   ;;  %p3682_p3 = pnand %p3681_p2, %p3675_p13 }
  0x8c   : > { %1093 = vmatprep.subr.bf16.mxu0 %v3311_v28  ;;  %3092 = vmatprep.subr.bf16.mxu1 %v3372_v25  ;;  %v3375_v28 = vld [vmem:[%s4760_s3 + $0x38] sm:$0xff]  }
  0x8d   : > { %3093 = vmatpush3.bf16.msra.mxu1 %v3373_v26  ;;  %v3443_v25 = vld [vmem:[%s4764_s7 + $0xc0] ss:$28 sps:$4 sm:$0xff]   ;;  %v3447_v26 = vld [vmem:[%s4764_s7 + $0x2b8] ss:$28 sps:$4 sm:$0xff]  }
  0x8e   : > { %1073 = vmatmul.mubr.bf16.vlgmr.msra.gmra.mrb[0].mxu0 %v368_v32  ;;  %3094 = vmatprep.subr.bf16.mxu1 %v3374_v27  ;;  %v3448_v27 = vld [vmem:[%s4764_s7 + $0xf8] ss:$28 sps:$4 sm:$0xff]  }
  0x8f   : > { %1094 = vmatpush1.bf16.msra.mxu0 %v3309_v31  ;;  %1082 = vmatprep.mubr.bf16.mxu0 %v376_v34  ;;  %v4221_v31 = vshrl.u32 %v480_v30, 7  ;;  %v2902_v30 = vld [vmem:[%s4761_s4] ss:$0 sm:$0xff] }
  0x90   : > { %1095 = vmatprep.subr.bf16.mxu0 %v3314_v33  ;;  %v478_v33 = vld [vmem:[%s4759_s2] sm:$0x3] }
  0x91   : > { %3095 = vmatpush3.bf16.msra.mxu1 %v3375_v28  ;;  %v4224_v32 = vsub.s32 0, %v4221_v31  ;;  %v4230_v34 = vsub.s32 1, %v4221_v31  ;;  %v3452_v28 = vld [vmem:[%s4764_s7 + $0x2f0] ss:$28 sps:$4 sm:$0xff]  }
  0x92   : > { %1509 = vmatprep.subr.bf16.mxu1 %v3378_v29 }
  0x93   : > { %1096 = vmatpush1.bf16.msra.mxu0 %v3312_v35  ;;  %v483_v35 = vrot.slane %v478_v33, %v4224_v32  ;;  %v487_v36 = vrot.slane %v478_v33, %v4230_v34 }
  0x94   : > { %1097 = vmatprep.subr.bf16.mxu0 %v3317_v38 }
  0x96   : > { %1083 = vmatmul.mubr.bf16.gmra.mrb[4].mxu0 %v375_v43 }
  0x97   : > { %1098 = vmatpush1.bf16.msra.mxu0 %v3315_v41  ;;  %1125 = vmatprep.mubr.bf16.mxu0 %v371_v44 }
  0x98   : > { %1099 = vmatprep.subr.bf16.mxu0 %v3320_v42 }
  0x9b   : > { %1100 = vmatpush1.bf16.msra.mxu0 %v3318_v45 }
  0x9c   : > { %1101 = vmatprep.subr.bf16.mxu0 %v3323_v46 }
  0x9f   : > { %1102 = vmatpush1.bf16.msra.mxu0 %v3321_v47 }
  0xa0   : > { %1103 = vmatprep.subr.bf16.mxu0 %v3326_v48 }
  0xa3   : > { %1104 = vmatpush1.bf16.msra.mxu0 %v3324_v49 }
  0xa4   : > { %1105 = vmatprep.subr.bf16.mxu0 %v3329_v50 }
  0xa7   : > { %1106 = vmatpush1.bf16.msra.mxu0 %v3327_v51 }
  0xa8   : > { %1107 = vmatprep.subr.bf16.mxu0 %v3332_v52  ;;  %v3376_v52 = vld [vmem:[%s4762_s5] ss:$8 sps:$4 sm:$0xff]  }
  0xab   : > { %1108 = vmatpush1.bf16.msra.mxu0 %v3330_v53 }
  0xac   : > { %1109 = vmatprep.subr.bf16.mxu0 %v3335_v54 }
  0xaf   : > { %1110 = vmatpush1.bf16.msra.mxu0 %v3333_v55  ;;  %v3381_v55 = vld [vmem:[%s4762_s5 + $0x14] ss:$8 sps:$4 sm:$0xff]  }
  0xb0   : > { %1111 = vmatprep.subr.bf16.mxu0 %v3338_v56 }
  0xb3   : > { %1112 = vmatpush1.bf16.msra.mxu0 %v3336_v57 }
  0xb4   : > { %1113 = vmatprep.subr.bf16.mxu0 %v3341_v58 }
  0xb7   : > { %1114 = vmatpush1.bf16.msra.mxu0 %v3339_v59 }
  0xb8   : > { %1115 = vmatprep.subr.bf16.mxu0 %v3344_v60 }
  0xbb   : > { %1116 = vmatpush1.bf16.msra.mxu0 %v3342_v61  ;;  %v3379_v61 = vld [vmem:[%s4762_s5 + $0x10] ss:$8 sps:$4 sm:$0xff]  }
  0xbc   : > { %1117 = vmatprep.subr.bf16.mxu0 %v3347_v62 }
  0xbf   : > { %1118 = vmatpush1.bf16.msra.mxu0 %v3345_v63 }
  0xc0   : > { %1119 = vmatprep.subr.bf16.mxu0 %v3350_v0  ;;  %v3384_v0 = vld [vmem:[%s4762_s5 + $0x24] ss:$8 sps:$4 sm:$0xff]  }
  0xc3   : > { %1120 = vmatpush1.bf16.msra.mxu0 %v3348_v1 }
  0xc4   : > { %1121 = vmatprep.subr.bf16.mxu0 %v3353_v2 }
  0xc7   : > { %1122 = vmatpush1.bf16.msra.mxu0 %v3351_v3 }
  0xc8   : > { %1123 = vmatprep.subr.bf16.mxu0 %v3356_v4 }
  0xcb   : > { %1124 = vmatpush1.bf16.msra.mxu0 %v3354_v5  ;;  %v3382_v5 = vld [vmem:[%s4762_s5 + $0x20] ss:$8 sps:$4 sm:$0xff]  }
  0xcc   : > { %1146 = vmatprep.subr.bf16.mxu0 %v3359_v8  ;;  %v3390_v8 = vld [vmem:[%s4762_s5 + $0x44] ss:$8 sps:$4 sm:$0xff]  }
  0xce   : > { %1126 = vmatmul.mubr.bf16.vlgmr.msra.gmra.mrb[0].mxu0 %v370_v11  ;;  %v3391_v11 = vld [vmem:[%s4762_s5 + $0x50] ss:$8 sps:$4 sm:$0xff]  }
  0xcf   : > { %1147 = vmatpush1.bf16.msra.mxu0 %v3357_v12  ;;  %1135 = vmatprep.mubr.bf16.mxu0 %v378_v13  ;;  %v3396_v12 = vld [vmem:[%s4762_s5 + $0x64] ss:$8 sps:$4 sm:$0xff]   ;;  %v3394_v13 = vld [vmem:[%s4762_s5 + $0x60] ss:$8 sps:$4 sm:$0xff]  }
  0xd0   : > { %3108 = vmatprep.subr.bf16.mxu0 %v3427_v18  ;;  %v3453_v18 = vld [vmem:[%s4764_s7 + $0x130] ss:$28 sps:$4 sm:$0xff]  }
  0xd6   : > { %1136 = vmatmul.mubr.bf16.gmra.mrb[4].mxu0 %v377_v16  ;;  %v3402_v16 = vld [vmem:[%s4764_s7 + $0x4] ss:$28 sps:$4 sm:$0xff]  }
  0xd7   : > { %1178 = vmatprep.mubr.bf16.mxu0 %v3736_v17 }
  0xde   : > { %2900 = vmatmul.mubr.msk.bf16.vlgmr.msra.gmra.mrb[0].mxu0 %vm980_vm0, %v372_v20  ;;  %v3432_v20 = vld [vmem:[%s4764_s7 + $0x210] ss:$28 sps:$4 sm:$0xff]  }
  0xdf   : > { %1188 = vmatprep.mubr.bf16.mxu0 %v3736_v17  ;;  %3109 = vmatpush3.bf16.msra.mxu0 %v3428_v19  ;;  %v3456_v19 = vld [vmem:[%s4764_s7 + $0x314] ss:$28 sps:$4 sm:$0xff]  }
  0xe0   : > { %3110 = vmatprep.subr.bf16.mxu0 %v3432_v20  ;;  %v3454_v20 = vld [vmem:[%s4764_s7 + $0x310] ss:$28 sps:$4 sm:$0xff]  }
  0xe3   : > { %3111 = vmatpush3.bf16.msra.mxu0 %v3433_v21  ;;  %v3457_v21 = vld [vmem:[%s4764_s7 + $0x328] ss:$28 sps:$4 sm:$0xff]  }
  0xe4   : > { %3112 = vmatprep.subr.bf16.mxu0 %v3437_v22  ;;  %v3458_v22 = vld [vmem:[%s4764_s7 + $0x168] ss:$28 sps:$4 sm:$0xff]  }
  0xe6   : > { %2901 = vmatmul.mubr.msk.bf16.gmra.mrb[4].mxu0 %vm980_vm0, %v379_v23  ;;  %v3438_v23 = vld [vmem:[%s4764_s7 + $0x88] ss:$28 sps:$4 sm:$0xff]  }
  0xe7   : > { %3113 = vmatpush3.bf16.msra.mxu0 %v3438_v23  ;;  %v3461_v23 = vld [vmem:[%s4764_s7 + $0x34c] ss:$28 sps:$4 sm:$0xff]  }
  0xe8   : > { %3114 = vmatprep.subr.bf16.mxu0 %v3442_v24  ;;  %v3459_v24 = vld [vmem:[%s4764_s7 + $0x348] ss:$28 sps:$4 sm:$0xff]  }
  0xeb   : > { %3115 = vmatpush3.bf16.msra.mxu0 %v3443_v25  ;;  %v3462_v25 = vld [vmem:[%s4764_s7 + $0x360] ss:$28 sps:$4 sm:$0xff]  }
  0xec   : > { %3116 = vmatprep.subr.bf16.mxu0 %v3447_v26  ;;  %v3463_v26 = vld [vmem:[%s4764_s7 + $0x1a0] ss:$28 sps:$4 sm:$0xff]  }
  0xef   : > { %3117 = vmatpush3.bf16.msra.mxu0 %v3448_v27  ;;  %v3466_v27 = vld [vmem:[%s4764_s7 + $0xc] ss:$28 sps:$4 sm:$0xff]  }
  0xf0   : > { %3118 = vmatprep.subr.bf16.mxu0 %v3452_v28  ;;  %v1417_v28 = vld [vmem:[%s4763_s6] sm:$0x3] }
  0xf3   : > { %3119 = vmatpush3.bf16.msra.mxu0 %v3453_v18  ;;  %v3494_v18 = vld [vmem:[%s4764_s7 + $0x238] ss:$28 sps:$4 sm:$0xff]  }
  0xf4   : > { %3120 = vmatprep.subr.bf16.mxu0 %v3457_v21  ;;  %v3502_v21 = vld [vmem:[%s4764_s7 + $0x2ac] ss:$28 sps:$4 sm:$0xff]  }
  0xf7   : > { %3121 = vmatpush3.bf16.msra.mxu0 %v3458_v22  ;;  %v3500_v22 = vld [vmem:[%s4764_s7 + $0x2a8] ss:$28 sps:$4 sm:$0xff]  }
  0xf8   : > { %3122 = vmatprep.subr.bf16.mxu0 %v3462_v25  ;;  %v3508_v25 = vld [vmem:[%s4764_s7 + $0x31c] ss:$28 sps:$4 sm:$0xff]  }
  0xfb   : > { %3123 = vmatpush3.bf16.msra.mxu0 %v3463_v26  ;;  %v3506_v26 = vld [vmem:[%s4764_s7 + $0x318] ss:$28 sps:$4 sm:$0xff]  }
 0x1b1   : > { %v1180_v37 = vpop.f32.mrb[0].mxu0 }
 0x1b2   : > { %v3136_v38 = vadd.f32 %v1180_v37, %v483_v35  ;;  %v1182_v39 = vpop.f32.mrb[1].mxu0 }
 0x1b3   : > { %v3137_v40 = vadd.f32 %v1182_v39, %v487_v36  ;;  %v1184_v41 = vpop.f32.mrb[2].mxu0 }
 0x1b4   : > { %v3138_v42 = vadd.f32 %v1184_v41, %v483_v35  ;;  %v1186_v43 = vpop.f32.mrb[3].mxu0  ;;  %v1199_v45 = vmax.f32 %v3136_v38, 0.0 }
 0x1b5   : > { %v3139_v44 = vadd.f32 %v1186_v43, %v487_v36  ;;  %v1200_v47 = vmax.f32 %v3137_v40, 0.0 }
 0x1b6   : > { %v1201_v46 = vmax.f32 %v3138_v42, 0.0 }
 0x1b7   : > { %v1202_v48 = vmax.f32 %v3139_v44, 0.0 }
 0x1b8   : > { %v1207_v49 = vpack.c.bf16 %v1201_v46, %v1199_v45  ;;  %v3400_v45 = vld [vmem:[%s4764_s7] ss:$28 sps:$4 sm:$0xff]  }
 0x1b9   : > { %v1190_v50 = vpop.f32.mrb[4].mxu0  ;;  %v1208_v51 = vpack.c.bf16 %v1202_v48, %v1200_v47 }
 0x1ba   : > { %v3140_v53 = vadd.f32 %v1190_v50, %v483_v35  ;;  %v1192_v54 = vpop.f32.mrb[5].mxu0 }
 0x1bb   : > { %v3141_v56 = vadd.f32 %v1192_v54, %v487_v36  ;;  %v1194_v57 = vpop.f32.mrb[6].mxu0  ;;  %1378 = vmatprep.mubr.bf16.mxu1 %v1208_v51 }
 0x1bc   : > { %v3142_v58 = vadd.f32 %v1194_v57, %v483_v35  ;;  %v1196_v59 = vpop.f32.mrb[7].mxu0  ;;  %1379 = vmatmul.mubr.bf16.vlgmr.msra.gmra.mrb[0].mxu1 %v1207_v49  ;;  %v1203_v62 = vmax.f32 %v3140_v53, 0.0  ;;  %v3405_v49 = vld [vmem:[%s4764_s7 + $0x3c] ss:$28 sps:$4 sm:$0xff]  }
 0x1bd   : > { %v3143_v60 = vadd.f32 %v1196_v59, %v487_v36  ;;  %1510 = vmatpush1.bf16.msra.mxu1 %v3376_v52  ;;  %v1204_v1 = vmax.f32 %v3141_v56, 0.0  ;;  %v3403_v53 = vld [vmem:[%s4764_s7 + $0x38] ss:$28 sps:$4 sm:$0xff]  }
 0x1be   : > { %v1205_v63 = vmax.f32 %v3142_v58, 0.0  ;;  %1511 = vmatprep.subr.bf16.mxu1 %v3381_v55  ;;  %v3408_v55 = vld [vmem:[%s4764_s7 + $0x74] ss:$28 sps:$4 sm:$0xff]  }
 0x1bf   : > { %v1206_v2 = vmax.f32 %v3143_v60, 0.0  ;;  %v3406_v58 = vld [vmem:[%s4764_s7 + $0x70] ss:$28 sps:$4 sm:$0xff]   ;;  %v3409_v60 = vld [vmem:[%s4764_s7 + $0xa8] ss:$28 sps:$4 sm:$0xff]  }
 0x1c0   : > { %v1209_v3 = vpack.c.bf16 %v1205_v63, %v1203_v62  ;;  %v3412_v62 = vld [vmem:[%s4764_s7 + $0xe0] ss:$28 sps:$4 sm:$0xff]  }
 0x1c1   : > { %v1210_v4 = vpack.c.bf16 %v1206_v2, %v1204_v1  ;;  %1512 = vmatpush1.bf16.msra.mxu1 %v3379_v61  ;;  %v3414_v61 = vld [vmem:[%s4764_s7 + $0xe4] ss:$28 sps:$4 sm:$0xff]   ;;  %v3417_v63 = vld [vmem:[%s4764_s7 + $0x11c] ss:$28 sps:$4 sm:$0xff]   ;;  %v3420_v1 = vld [vmem:[%s4764_s7 + $0x154] ss:$28 sps:$4 sm:$0xff]  }
 0x1c2   : > { %1513 = vmatprep.subr.bf16.mxu1 %v3384_v0  ;;  %v3415_v0 = vld [vmem:[%s4764_s7 + $0x118] ss:$28 sps:$4 sm:$0xff]   ;;  %v3418_v2 = vld [vmem:[%s4764_s7 + $0x150] ss:$28 sps:$4 sm:$0xff]  }
 0x1c3   : > { %1386 = vmatprep.mubr.bf16.mxu1 %v1210_v4  ;;  %v3421_v4 = vld [vmem:[%s4764_s7 + $0x188] ss:$28 sps:$4 sm:$0xff]  }
 0x1c4   : > { %1387 = vmatmul.mubr.bf16.gmra.mrb[4].mxu1 %v1209_v3  ;;  %v3423_v3 = vld [vmem:[%s4764_s7 + $0x18c] ss:$28 sps:$4 sm:$0xff]  }
 0x1c5   : > { %1514 = vmatpush1.bf16.msra.mxu1 %v3382_v5  ;;  %1541 = vmatprep.mubr.bf16.mxu1 %v3736_v17  ;;  %v3426_v5 = vld [vmem:[%s4764_s7 + $0x1c4] ss:$28 sps:$4 sm:$0xff]  }
 0x1c6   : > { %1515 = vmatprep.subr.bf16.mxu1 %v3387_v6  ;;  %v3424_v6 = vld [vmem:[%s4764_s7 + $0x1c0] ss:$28 sps:$4 sm:$0xff]  }
 0x1c9   : > { %1516 = vmatpush1.bf16.msra.mxu1 %v3385_v7  ;;  %v3431_v7 = vld [vmem:[%s4764_s7 + $0x1fc] ss:$28 sps:$4 sm:$0xff]  }
 0x1ca   : > { %1517 = vmatprep.subr.bf16.mxu1 %v3390_v8  ;;  %v3429_v8 = vld [vmem:[%s4764_s7 + $0x1f8] ss:$28 sps:$4 sm:$0xff]  }
 0x1cd   : > { %1518 = vmatpush1.bf16.msra.mxu1 %v3388_v9  ;;  %v3436_v9 = vld [vmem:[%s4764_s7 + $0x234] ss:$28 sps:$4 sm:$0xff]  }
 0x1ce   : > { %1519 = vmatprep.subr.bf16.mxu1 %v3393_v10  ;;  %v3434_v10 = vld [vmem:[%s4764_s7 + $0x230] ss:$28 sps:$4 sm:$0xff]  }
 0x1d1   : > { %1520 = vmatpush1.bf16.msra.mxu1 %v3391_v11  ;;  %v3441_v11 = vld [vmem:[%s4764_s7 + $0x26c] ss:$28 sps:$4 sm:$0xff]  }
 0x1d2   : > { %1521 = vmatprep.subr.bf16.mxu1 %v3396_v12  ;;  %v3439_v12 = vld [vmem:[%s4764_s7 + $0x268] ss:$28 sps:$4 sm:$0xff]  }
 0x1d5   : > { %1522 = vmatpush1.bf16.msra.mxu1 %v3394_v13  ;;  %v3446_v13 = vld [vmem:[%s4764_s7 + $0x2a4] ss:$28 sps:$4 sm:$0xff]  }
 0x1d6   : > { %1523 = vmatprep.subr.bf16.mxu1 %v3399_v14  ;;  %v3444_v14 = vld [vmem:[%s4764_s7 + $0x2a0] ss:$28 sps:$4 sm:$0xff]  }
 0x1d9   : > { %1524 = vmatpush1.bf16.msra.mxu1 %v3397_v15  ;;  %v3451_v15 = vld [vmem:[%s4764_s7 + $0x2dc] ss:$28 sps:$4 sm:$0xff]  }
 0x1da   : > { %2315 = vmatprep.subr.bf16.mxu1 %v3402_v16  ;;  %v3449_v16 = vld [vmem:[%s4764_s7 + $0x2d8] ss:$28 sps:$4 sm:$0xff]  }
 0x28f   : > { %v3096_v29 = vpop.f32.mrb[0].mxu1 }
 0x290   : > { %v3097_v33 = vpop.f32.mrb[1].mxu1 }
 0x291   : > { %v3098_v35 = vadd.f32 %v3097_v33, %v3096_v29  ;;  %v3099_v36 = vpop.f32.mrb[2].mxu1  ;;  %v1422_v29 = vrot.slane %v1417_v28, %v4224_v32 }
 0x292   : > { %v3100_v37 = vpop.f32.mrb[3].mxu1 }
 0x293   : > { %v1381_v38 = vadd.f32 %v3098_v35, %v2902_v30  ;;  %v3101_v39 = vadd.f32 %v3100_v37, %v3099_v36 }
 0x295   : > { %v1384_v40 = vadd.f32 %v3101_v39, %v2902_v30  ;;  %v1395_v41 = vmax.f32 %v1381_v38, 0.0 }
 0x297   : > { %v1396_v42 = vmax.f32 %v1384_v40, 0.0  ;;  %v3102_v43 = vpop.f32.mrb[4].mxu1 }
 0x298   : > { %v3103_v44 = vpop.f32.mrb[5].mxu1 }
 0x299   : > { %v1399_v46 = vpack.c.bf16 %v1396_v42, %v1395_v41  ;;  %v3104_v47 = vadd.f32 %v3103_v44, %v3102_v43  ;;  %v3105_v48 = vpop.f32.mrb[6].mxu1 }
 0x29a   : > { %v3106_v50 = vpop.f32.mrb[7].mxu1 }
 0x29b   : > { %v1389_v51 = vadd.f32 %v3104_v47, %v2902_v30  ;;  %v3107_v52 = vadd.f32 %v3106_v50, %v3105_v48  ;;  %1542 = vmatmul.mubr.bf16.vlgmr.msra.gmra.mrb[8].mxu1 %v1399_v46 }
 0x29c   : > { %1551 = vmatprep.mubr.bf16.mxu1 %v3736_v17  ;;  %2316 = vmatpush1.bf16.msra.mxu1 %v3400_v45  ;;  %v3411_v17 = vld [vmem:[%s4764_s7 + $0xac] ss:$28 sps:$4 sm:$0xff]  }
 0x29d   : > { %v1392_v54 = vadd.f32 %v3107_v52, %v2902_v30  ;;  %2317 = vmatprep.subr.bf16.mxu1 %v3405_v49  ;;  %v1397_v56 = vmax.f32 %v1389_v51, 0.0  ;;  %v1426_v30 = vrot.slane %v1417_v28, %v4230_v34  ;;  %v3464_v49 = vld [vmem:[%s4764_s7 + $0x8] ss:$28 sps:$4 sm:$0xff]   ;;  %v3509_v28 = vld [vmem:[%s4764_s7 + $0x350] ss:$28 sps:$4 sm:$0xff]  }
 0x29e   : > { %v3469_v52 = vld [vmem:[%s4764_s7 + $0x44] ss:$28 sps:$4 sm:$0xff]  }
 0x29f   : > { %v1398_v57 = vmax.f32 %v1392_v54, 0.0 }
 0x2a0   : > { %2318 = vmatpush1.bf16.msra.mxu1 %v3403_v53 }
 0x2a1   : > { %v1400_v59 = vpack.c.bf16 %v1398_v57, %v1397_v56  ;;  %2319 = vmatprep.subr.bf16.mxu1 %v3408_v55 }
 0x2a3   : > { %1552 = vmatmul.mubr.bf16.gmra.mrb[12].mxu1 %v1400_v59 }
 0x2a4   : > { %2320 = vmatpush1.bf16.msra.mxu1 %v3406_v58  ;;  %v3467_v58 = vld [vmem:[%s4764_s7 + $0x40] ss:$28 sps:$4 sm:$0xff]  }
 0x2a5   : > { %2321 = vmatprep.subr.bf16.mxu1 %v3411_v17 }
 0x2a8   : > { %2322 = vmatpush1.bf16.msra.mxu1 %v3409_v60  ;;  %v3472_v60 = vld [vmem:[%s4764_s7 + $0x7c] ss:$28 sps:$4 sm:$0xff]  }
 0x2a9   : > { %2323 = vmatprep.subr.bf16.mxu1 %v3414_v61 }
 0x2ac   : > { %2324 = vmatpush1.bf16.msra.mxu1 %v3412_v62 }
 0x2ad   : > { %2325 = vmatprep.subr.bf16.mxu1 %v3417_v63 }
 0x2b0   : > { %2326 = vmatpush1.bf16.msra.mxu1 %v3415_v0 }
 0x2b1   : > { %2327 = vmatprep.subr.bf16.mxu1 %v3420_v1  ;;  %v3470_v1 = vld [vmem:[%s4764_s7 + $0x78] ss:$28 sps:$4 sm:$0xff]  }
 0x2b4   : > { %2328 = vmatpush1.bf16.msra.mxu1 %v3418_v2  ;;  %v3475_v2 = vld [vmem:[%s4764_s7 + $0xb4] ss:$28 sps:$4 sm:$0xff]  }
 0x2b5   : > { %2329 = vmatprep.subr.bf16.mxu1 %v3423_v3  ;;  %v3473_v3 = vld [vmem:[%s4764_s7 + $0xb0] ss:$28 sps:$4 sm:$0xff]  }
 0x2b8   : > { %2330 = vmatpush1.bf16.msra.mxu1 %v3421_v4  ;;  %v3478_v4 = vld [vmem:[%s4764_s7 + $0xec] ss:$28 sps:$4 sm:$0xff]  }
 0x2b9   : > { %2331 = vmatprep.subr.bf16.mxu1 %v3426_v5  ;;  %v3476_v5 = vld [vmem:[%s4764_s7 + $0xe8] ss:$28 sps:$4 sm:$0xff]  }
 0x2bc   : > { %2332 = vmatpush1.bf16.msra.mxu1 %v3424_v6  ;;  %v3481_v6 = vld [vmem:[%s4764_s7 + $0x124] ss:$28 sps:$4 sm:$0xff]  }
 0x2bd   : > { %2333 = vmatprep.subr.bf16.mxu1 %v3431_v7  ;;  %v3479_v7 = vld [vmem:[%s4764_s7 + $0x120] ss:$28 sps:$4 sm:$0xff]  }
 0x2c0   : > { %2334 = vmatpush1.bf16.msra.mxu1 %v3429_v8  ;;  %v3484_v8 = vld [vmem:[%s4764_s7 + $0x15c] ss:$28 sps:$4 sm:$0xff]  }
 0x2c1   : > { %2335 = vmatprep.subr.bf16.mxu1 %v3436_v9  ;;  %v3482_v9 = vld [vmem:[%s4764_s7 + $0x158] ss:$28 sps:$4 sm:$0xff]  }
 0x2c4   : > { %2336 = vmatpush1.bf16.msra.mxu1 %v3434_v10  ;;  %v3487_v10 = vld [vmem:[%s4764_s7 + $0x194] ss:$28 sps:$4 sm:$0xff]  }
 0x2c5   : > { %2337 = vmatprep.subr.bf16.mxu1 %v3441_v11  ;;  %v3485_v11 = vld [vmem:[%s4764_s7 + $0x190] ss:$28 sps:$4 sm:$0xff]  }
 0x2c8   : > { %2338 = vmatpush1.bf16.msra.mxu1 %v3439_v12  ;;  %v3490_v12 = vld [vmem:[%s4764_s7 + $0x1cc] ss:$28 sps:$4 sm:$0xff]  }
 0x2c9   : > { %2339 = vmatprep.subr.bf16.mxu1 %v3446_v13  ;;  %v3488_v13 = vld [vmem:[%s4764_s7 + $0x1c8] ss:$28 sps:$4 sm:$0xff]  }
 0x2cc   : > { %2340 = vmatpush1.bf16.msra.mxu1 %v3444_v14  ;;  %v3493_v14 = vld [vmem:[%s4764_s7 + $0x204] ss:$28 sps:$4 sm:$0xff]  }
 0x2cd   : > { %2341 = vmatprep.subr.bf16.mxu1 %v3451_v15  ;;  %v3491_v15 = vld [vmem:[%s4764_s7 + $0x200] ss:$28 sps:$4 sm:$0xff]  }
 0x2d0   : > { %2342 = vmatpush1.bf16.msra.mxu1 %v3449_v16  ;;  %v3496_v16 = vld [vmem:[%s4764_s7 + $0x23c] ss:$28 sps:$4 sm:$0xff]  }
 0x2d1   : > { %2343 = vmatprep.subr.bf16.mxu1 %v3456_v19  ;;  %v3499_v19 = vld [vmem:[%s4764_s7 + $0x274] ss:$28 sps:$4 sm:$0xff]  }
 0x2d4   : > { %2344 = vmatpush1.bf16.msra.mxu1 %v3454_v20  ;;  %v3497_v20 = vld [vmem:[%s4764_s7 + $0x270] ss:$28 sps:$4 sm:$0xff]  }
 0x2d5   : > { %2345 = vmatprep.subr.bf16.mxu1 %v3461_v23  ;;  %v3505_v23 = vld [vmem:[%s4764_s7 + $0x2e4] ss:$28 sps:$4 sm:$0xff]  }
 0x2d8   : > { %2346 = vmatpush1.bf16.msra.mxu1 %v3459_v24  ;;  %v3503_v24 = vld [vmem:[%s4764_s7 + $0x2e0] ss:$28 sps:$4 sm:$0xff]  }
 0x2d9   : > { %2368 = vmatprep.subr.bf16.mxu1 %v3466_v27  ;;  %v3511_v27 = vld [vmem:[%s4764_s7 + $0x354] ss:$28 sps:$4 sm:$0xff]  }
 0x36e   : > { %v1543_v33 = vpop.f32.mrb[8].mxu1 }
 0x36f   : > { %v1544_v35 = vadd.f32 %v1543_v33, %v1422_v29  ;;  %v1545_v36 = vpop.f32.mrb[9].mxu1  ;;  %v3517_v33 = vld [vmem:[%s4764_s7 + $0x4c] ss:$28 sps:$4 sm:$0xff]  }
 0x370   : > { %v1546_v37 = vadd.f32 %v1545_v36, %v1426_v30  ;;  %v1547_v38 = vpop.f32.mrb[10].mxu1  ;;  %v3520_v36 = vld [vmem:[%s4764_s7 + $0x84] ss:$28 sps:$4 sm:$0xff]  }
 0x371   : > { %v1548_v39 = vadd.f32 %v1547_v38, %v1422_v29  ;;  %v1549_v40 = vpop.f32.mrb[11].mxu1  ;;  %v1562_v42 = vmax.f32 %v1544_v35, 0.0  ;;  %v3515_v35 = vld [vmem:[%s4764_s7 + $0x48] ss:$28 sps:$4 sm:$0xff]   ;;  %v3523_v38 = vld [vmem:[%s4764_s7 + $0xbc] ss:$28 sps:$4 sm:$0xff]  }
 0x372   : > { %v1550_v41 = vadd.f32 %v1549_v40, %v1426_v30  ;;  %v1563_v44 = vmax.f32 %v1546_v37, 0.0  ;;  %v3518_v37 = vld [vmem:[%s4764_s7 + $0x80] ss:$28 sps:$4 sm:$0xff]   ;;  %v3526_v40 = vld [vmem:[%s4764_s7 + $0xf4] ss:$28 sps:$4 sm:$0xff]  }
 0x373   : > { %v1564_v43 = vmax.f32 %v1548_v39, 0.0  ;;  %v3521_v39 = vld [vmem:[%s4764_s7 + $0xb8] ss:$28 sps:$4 sm:$0xff]  }
 0x374   : > { %v1565_v45 = vmax.f32 %v1550_v41, 0.0  ;;  %v3524_v41 = vld [vmem:[%s4764_s7 + $0xf0] ss:$28 sps:$4 sm:$0xff]  }
 0x375   : > { %v4436_v46 = vpack.c.bf16 %v1564_v43, %v1562_v42  ;;  %v3529_v42 = vld [vmem:[%s4764_s7 + $0x12c] ss:$28 sps:$4 sm:$0xff]  }
 0x376   : > { %v4438_v47 = vpack.c.bf16 %v1565_v45, %v1563_v44  ;;  %v1553_v48 = vpop.f32.mrb[12].mxu1  ;;  %v3527_v43 = vld [vmem:[%s4764_s7 + $0x128] ss:$28 sps:$4 sm:$0xff]   ;;  %v3530_v45 = vld [vmem:[%s4764_s7 + $0x160] ss:$28 sps:$4 sm:$0xff]  }
 0x377   : > { %v1554_v50 = vadd.f32 %v1553_v48, %v1422_v29  ;;  %v1555_v51 = vpop.f32.mrb[13].mxu1  ;;  %v3532_v44 = vld [vmem:[%s4764_s7 + $0x164] ss:$28 sps:$4 sm:$0xff]   ;;  %v3533_v48 = vld [vmem:[%s4764_s7 + $0x198] ss:$28 sps:$4 sm:$0xff]  }
 0x378   : > { %v1556_v53 = vadd.f32 %v1555_v51, %v1426_v30  ;;  %v1557_v54 = vpop.f32.mrb[14].mxu1  ;;  %2347 = vmatprep.mubr.bf16.mxu1 %v4438_v47  ;;  %2506 = vmatprep.mubr.bf16.mxu0 %v4438_v47  ;;  %v3541_v51 = vld [vmem:[%s4764_s7 + $0x20c] ss:$28 sps:$4 sm:$0xff]  }
 0x379   : > { %v1558_v55 = vadd.f32 %v1557_v54, %v1422_v29  ;;  %v1559_v56 = vpop.f32.mrb[15].mxu1  ;;  %2348 = vmatmul.mubr.bf16.vlgmr.msra.gmra.mrb[16].mxu1 %v4436_v46  ;;  %2507 = vmatmul.mubr.bf16.vlgmr.msra.gmra.mrb[8].mxu0 %v4436_v46  ;;  %v1566_v59 = vmax.f32 %v1554_v50, 0.0  ;;  %v3514_v29 = vld [vmem:[%s4764_s7 + $0x14] ss:$28 sps:$4 sm:$0xff]   ;;  %v3542_v54 = vld [vmem:[%s4764_s7 + $0x240] ss:$28 sps:$4 sm:$0xff]  }
 0x37a   : > { %v1560_v57 = vadd.f32 %v1559_v56, %v1426_v30  ;;  %2369 = vmatpush1.bf16.msra.mxu1 %v3464_v49  ;;  %v1567_v61 = vmax.f32 %v1556_v53, 0.0  ;;  %v3512_v30 = vld [vmem:[%s4764_s7 + $0x10] ss:$28 sps:$4 sm:$0xff]   ;;  %v3544_v53 = vld [vmem:[%s4764_s7 + $0x244] ss:$28 sps:$4 sm:$0xff]  }
 0x37b   : > { %v1568_v17 = vmax.f32 %v1558_v55, 0.0  ;;  %2370 = vmatprep.subr.bf16.mxu1 %v3469_v52  ;;  %v3538_v49 = vld [vmem:[%s4764_s7 + $0x1d4] ss:$28 sps:$4 sm:$0xff]   ;;  %v3539_v52 = vld [vmem:[%s4764_s7 + $0x208] ss:$28 sps:$4 sm:$0xff]  }
 0x37c   : > { %v1569_v62 = vmax.f32 %v1560_v57, 0.0  ;;  %v3536_v50 = vld [vmem:[%s4764_s7 + $0x1d0] ss:$28 sps:$4 sm:$0xff]   ;;  %v3547_v55 = vld [vmem:[%s4764_s7 + $0x27c] ss:$28 sps:$4 sm:$0xff]  }
 0x37d   : > { %v4456_v63 = vpack.c.bf16 %v1568_v17, %v1566_v59  ;;  %v3545_v56 = vld [vmem:[%s4764_s7 + $0x278] ss:$28 sps:$4 sm:$0xff]   ;;  %v3553_v59 = vld [vmem:[%s4764_s7 + $0x2ec] ss:$28 sps:$4 sm:$0xff]  }
 0x37e   : > { %v4458_v0 = vpack.c.bf16 %v1569_v62, %v1567_v61  ;;  %2371 = vmatpush1.bf16.msra.mxu1 %v3467_v58  ;;  %v3550_v57 = vld [vmem:[%s4764_s7 + $0x2b4] ss:$28 sps:$4 sm:$0xff]   ;;  %v3551_v17 = vld [vmem:[%s4764_s7 + $0x2e8] ss:$28 sps:$4 sm:$0xff]   ;;  %v3554_v61 = vld [vmem:[%s4764_s7 + $0x320] ss:$28 sps:$4 sm:$0xff]  }
 0x37f   : > { %2372 = vmatprep.subr.bf16.mxu1 %v3472_v60  ;;  %v3548_v58 = vld [vmem:[%s4764_s7 + $0x2b0] ss:$28 sps:$4 sm:$0xff]   ;;  %v3556_v60 = vld [vmem:[%s4764_s7 + $0x324] ss:$28 sps:$4 sm:$0xff]   ;;  %v3559_v62 = vld [vmem:[%s4764_s7 + $0x35c] ss:$28 sps:$4 sm:$0xff]  }
 0x380   : > { %2357 = vmatprep.mubr.bf16.mxu1 %v4458_v0  ;;  %2514 = vmatprep.mubr.bf16.mxu0 %v4458_v0 }
 0x381   : > { %2358 = vmatmul.mubr.bf16.gmra.mrb[20].mxu1 %v4456_v63  ;;  %2515 = vmatmul.mubr.bf16.gmra.mrb[12].mxu0 %v4456_v63 }
 0x382   : > { %2373 = vmatpush1.bf16.msra.mxu1 %v3470_v1  ;;  %2400 = vmatprep.mubr.bf16.mxu1 %v4438_v47  ;;  %v3557_v1 = vld [vmem:[%s4764_s7 + $0x358] ss:$28 sps:$4 sm:$0xff]  }
 0x383   : > { %2374 = vmatprep.subr.bf16.mxu1 %v3475_v2  ;;  %v4652_v2 = vld [vmem:[%s4765_s8] sm:$0x7f] }
 0x386   : > { %2375 = vmatpush1.bf16.msra.mxu1 %v3473_v3  ;;  %v1730_v3 = vsub.s32 6, %v4221_v31 }
 0x387   : > { %2376 = vmatprep.subr.bf16.mxu1 %v3478_v4  ;;  %v1707_v4 = vrot.slane %v4652_v2, %v4224_v32 }
 0x38a   : > { %2377 = vmatpush1.bf16.msra.mxu1 %v3476_v5  ;;  %v1711_v5 = vrot.slane %v4652_v2, %v4230_v34 }
 0x38b   : > { %2378 = vmatprep.subr.bf16.mxu1 %v3481_v6 }
 0x38e   : > { %2379 = vmatpush1.bf16.msra.mxu1 %v3479_v7 }
 0x38f   : > { %2380 = vmatprep.subr.bf16.mxu1 %v3484_v8 }
 0x392   : > { %2381 = vmatpush1.bf16.msra.mxu1 %v3482_v9 }
 0x393   : > { %2382 = vmatprep.subr.bf16.mxu1 %v3487_v10 }
 0x396   : > { %2383 = vmatpush1.bf16.msra.mxu1 %v3485_v11 }
 0x397   : > { %2384 = vmatprep.subr.bf16.mxu1 %v3490_v12 }
 0x39a   : > { %2385 = vmatpush1.bf16.msra.mxu1 %v3488_v13 }
 0x39b   : > { %2386 = vmatprep.subr.bf16.mxu1 %v3493_v14 }
 0x39e   : > { %2387 = vmatpush1.bf16.msra.mxu1 %v3491_v15 }
 0x39f   : > { %2388 = vmatprep.subr.bf16.mxu1 %v3496_v16 }
 0x3a2   : > { %2389 = vmatpush1.bf16.msra.mxu1 %v3494_v18 }
 0x3a3   : > { %2390 = vmatprep.subr.bf16.mxu1 %v3499_v19 }
 0x3a6   : > { %2391 = vmatpush1.bf16.msra.mxu1 %v3497_v20 }
 0x3a7   : > { %2392 = vmatprep.subr.bf16.mxu1 %v3502_v21 }
 0x3aa   : > { %2393 = vmatpush1.bf16.msra.mxu1 %v3500_v22 }
 0x3ab   : > { %2394 = vmatprep.subr.bf16.mxu1 %v3505_v23 }
 0x3ae   : > { %2395 = vmatpush1.bf16.msra.mxu1 %v3503_v24 }
 0x3af   : > { %2396 = vmatprep.subr.bf16.mxu1 %v3508_v25 }
 0x3b2   : > { %2397 = vmatpush1.bf16.msra.mxu1 %v3506_v26 }
 0x3b3   : > { %2398 = vmatprep.subr.bf16.mxu1 %v3511_v27 }
 0x3b6   : > { %2399 = vmatpush1.bf16.msra.mxu1 %v3509_v28 }
 0x3b7   : > { %2421 = vmatprep.subr.bf16.mxu1 %v3514_v29 }
 0x3b9   : > { %2401 = vmatmul.mubr.bf16.vlgmr.msra.gmra.mrb[24].mxu1 %v4436_v46 }
 0x3ba   : > { %2410 = vmatprep.mubr.bf16.mxu1 %v4458_v0  ;;  %2422 = vmatpush1.bf16.msra.mxu1 %v3512_v30 }
 0x3bb   : > { %2423 = vmatprep.subr.bf16.mxu1 %v3517_v33 }
 0x3be   : > { %2424 = vmatpush1.bf16.msra.mxu1 %v3515_v35 }
 0x3bf   : > { %2425 = vmatprep.subr.bf16.mxu1 %v3520_v36 }
 0x3c1   : > { %2411 = vmatmul.mubr.bf16.gmra.mrb[28].mxu1 %v4456_v63 }
 0x3c2   : > { %2426 = vmatpush1.bf16.msra.mxu1 %v3518_v37  ;;  %2453 = vmatprep.mubr.bf16.mxu1 %v4438_v47  ;;  %v3535_v47 = vld [vmem:[%s4764_s7 + $0x19c] ss:$28 sps:$4 sm:$0xff]  }
 0x3c3   : > { %2427 = vmatprep.subr.bf16.mxu1 %v3523_v38 }
 0x3c6   : > { %2428 = vmatpush1.bf16.msra.mxu1 %v3521_v39 }
 0x3c7   : > { %2429 = vmatprep.subr.bf16.mxu1 %v3526_v40 }
 0x3ca   : > { %2430 = vmatpush1.bf16.msra.mxu1 %v3524_v41 }
 0x3cb   : > { %2431 = vmatprep.subr.bf16.mxu1 %v3529_v42 }
 0x3ce   : > { %2432 = vmatpush1.bf16.msra.mxu1 %v3527_v43 }
 0x3cf   : > { %2433 = vmatprep.subr.bf16.mxu1 %v3532_v44 }
 0x3d2   : > { %2434 = vmatpush1.bf16.msra.mxu1 %v3530_v45 }
 0x3d3   : > { %2435 = vmatprep.subr.bf16.mxu1 %v3535_v47 }
 0x3d6   : > { %2436 = vmatpush1.bf16.msra.mxu1 %v3533_v48 }
 0x3d7   : > { %2437 = vmatprep.subr.bf16.mxu1 %v3538_v49 }
 0x3da   : > { %2438 = vmatpush1.bf16.msra.mxu1 %v3536_v50 }
 0x3db   : > { %2439 = vmatprep.subr.bf16.mxu1 %v3541_v51 }
 0x3de   : > { %2440 = vmatpush1.bf16.msra.mxu1 %v3539_v52 }
 0x3df   : > { %2441 = vmatprep.subr.bf16.mxu1 %v3544_v53 }
 0x3e2   : > { %2442 = vmatpush1.bf16.msra.mxu1 %v3542_v54 }
 0x3e3   : > { %2443 = vmatprep.subr.bf16.mxu1 %v3547_v55 }
 0x3e6   : > { %2444 = vmatpush1.bf16.msra.mxu1 %v3545_v56 }
 0x3e7   : > { %2445 = vmatprep.subr.bf16.mxu1 %v3550_v57 }
 0x3ea   : > { %2446 = vmatpush1.bf16.msra.mxu1 %v3548_v58 }
 0x3eb   : > { %2447 = vmatprep.subr.bf16.mxu1 %v3553_v59 }
 0x3ee   : > { %2448 = vmatpush1.bf16.msra.mxu1 %v3551_v17 }
 0x3ef   : > { %2449 = vmatprep.subr.bf16.mxu1 %v3556_v60 }
 0x3f2   : > { %2450 = vmatpush1.bf16.msra.mxu1 %v3554_v61 }
 0x3f3   : > { %2451 = vmatprep.subr.bf16.mxu1 %v3559_v62 }
 0x3f6   : > { %2452 = vmatpush1.bf16.msra.mxu1 %v3557_v1 }
 0x3f9   : > { %2454 = vmatmul.mubr.bf16.vlgmr.msra.gmra.mrb[32].mxu1 %v4436_v46  ;;  %v1731_v46 = vrot.slane %v4652_v2, %v1730_v3 }
 0x3fa   : > { %2463 = vmatprep.mubr.bf16.mxu1 %v4458_v0 }
 0x401   : > { %2464 = vmatmul.mubr.bf16.gmra.mrb[36].mxu1 %v4456_v63 }
 0x44c   : > { %v2349_v6 = vpop.f32.mrb[16].mxu1  ;;  %v3124_v7 = vpop.f32.mrb[8].mxu0 }
 0x44d   : > { %v2350_v0 = vadd.f32 %v2349_v6, %v1707_v4  ;;  %v2351_v8 = vpop.f32.mrb[17].mxu1  ;;  %v3125_v63 = vpop.f32.mrb[9].mxu0 }
 0x44e   : > { %v2352_v9 = vadd.f32 %v2351_v8, %v1711_v5  ;;  %v3126_v10 = vadd.f32 %v3125_v63, %v3124_v7  ;;  %v2353_v11 = vpop.f32.mrb[18].mxu1  ;;  %v3127_v12 = vpop.f32.mrb[10].mxu0 }
 0x44f   : > { %v3047_v13 = vmul.f32 -1.442695, %v2350_v0  ;;  %v2354_v14 = vadd.f32 %v2353_v11, %v1707_v4  ;;  %v2355_v15 = vpop.f32.mrb[19].mxu1  ;;  %v3128_v16 = vpop.f32.mrb[11].mxu0 }
 0x450   : > { %v3048_v18 = vmul.f32 -1.442695, %v2352_v9  ;;  %v2509_v32 = vadd.f32 %v3126_v10, %v1731_v46  ;;  %v2356_v19 = vadd.f32 %v2355_v15, %v1711_v5  ;;  %v3129_v20 = vadd.f32 %v3128_v16, %v3127_v12 }
 0x451   : > { %3560 = vpow2.f32 %v3047_v13  ;;  %v3054_v34 = vmul.f32 -1.442695, %v2354_v14 }
 0x452   : > { %3562 = vpow2.f32 %v3048_v18  ;;  %v3053_v21 = vmul.f32 -1.442695, %v2509_v32  ;;  %v3055_v22 = vmul.f32 -1.442695, %v2356_v19  ;;  %v2512_v23 = vadd.f32 %v3129_v20, %v1731_v46 }
 0x453   : > { %3564 = vpow2.f32 %v3054_v34 }
 0x454   : > { %3566 = vpow2.f32 %v3053_v21  ;;  %v3060_v24 = vmul.f32 -1.442695, %v2512_v23  ;;  %v2359_v25 = vpop.f32.mrb[20].mxu1  ;;  %v3130_v26 = vpop.f32.mrb[12].mxu0  ;;  %v1714_v21 = vsub.s32 2, %v4221_v31 }
 0x455   : > { %3568 = vpow2.f32 %v3055_v22  ;;  %v2360_v27 = vadd.f32 %v2359_v25, %v1707_v4  ;;  %v2361_v28 = vpop.f32.mrb[21].mxu1  ;;  %v3131_v29 = vpop.f32.mrb[13].mxu0  ;;  %v1718_v22 = vsub.s32 3, %v4221_v31 }
 0x456   : > { %3570 = vpow2.f32 %v3060_v24  ;;  %v2362_v30 = vadd.f32 %v2361_v28, %v1711_v5  ;;  %v3132_v33 = vadd.f32 %v3131_v29, %v3130_v26  ;;  %v2363_v35 = vpop.f32.mrb[22].mxu1  ;;  %v3133_v36 = vpop.f32.mrb[14].mxu0  ;;  %v1715_v23 = vrot.slane %v4652_v2, %v1714_v21 }
 0x457   : > { %v3061_v37 = vmul.f32 -1.442695, %v2360_v27  ;;  %v2364_v38 = vadd.f32 %v2363_v35, %v1707_v4  ;;  %v2365_v39 = vpop.f32.mrb[23].mxu1  ;;  %v3134_v40 = vpop.f32.mrb[15].mxu0  ;;  %v1719_v24 = vrot.slane %v4652_v2, %v1718_v22 }
 0x458   : > { %v3062_v41 = vmul.f32 -1.442695, %v2362_v30  ;;  %v2517_v42 = vadd.f32 %v3132_v33, %v1731_v46  ;;  %v2366_v43 = vadd.f32 %v2365_v39, %v1711_v5  ;;  %v3135_v44 = vadd.f32 %v3134_v40, %v3133_v36 }
 0x459   : > { %3572 = vpow2.f32 %v3061_v37  ;;  %v3068_v45 = vmul.f32 -1.442695, %v2364_v38 }
 0x45a   : > { %3574 = vpow2.f32 %v3062_v41  ;;  %v3067_v47 = vmul.f32 -1.442695, %v2517_v42  ;;  %v3069_v48 = vmul.f32 -1.442695, %v2366_v43  ;;  %v2520_v52 = vadd.f32 %v3135_v44, %v1731_v46 }
 0x45b   : > { %v3561_v49 = vpop.eup %3560  ;;  %3576 = vpow2.f32 %v3068_v45 }
 0x45c   : > { %v3563_v50 = vpop.eup %3562  ;;  %v2607_v51 = vadd.f32 1.0, %v3561_v49  ;;  %3578 = vpow2.f32 %v3067_v47  ;;  %v3074_v60 = vmul.f32 -1.442695, %v2520_v52 }
 0x45d   : > { %v3565_v53 = vpop.eup %3564  ;;  %v2608_v54 = vadd.f32 1.0, %v3563_v50  ;;  %3580 = vpow2.f32 %v3069_v48 }
 0x45e   : > { %v3567_v55 = vpop.eup %3566  ;;  %3582 = vrcp.f32 %v2607_v51  ;;  %v2614_v56 = vadd.f32 1.0, %v3565_v53 }
 0x45f   : > { %v3569_v57 = vpop.eup %3568  ;;  %3584 = vrcp.f32 %v2608_v54  ;;  %v2613_v58 = vadd.f32 1.0, %v3567_v55 }
 0x460   : > { %v3571_v59 = vpop.eup %3570  ;;  %3586 = vrcp.f32 %v2614_v56  ;;  %v2615_v17 = vadd.f32 1.0, %v3569_v57 }
 0x461   : > { %3588 = vrcp.f32 %v2613_v58  ;;  %v2620_v61 = vadd.f32 1.0, %v3571_v59 }
 0x462   : > { %3590 = vrcp.f32 %v2615_v17 }
 0x463   : > { %v3573_v62 = vpop.eup %3572  ;;  %3592 = vrcp.f32 %v2620_v61 }
 0x464   : > { %v3575_v1 = vpop.eup %3574  ;;  %v2621_v3 = vadd.f32 1.0, %v3573_v62  ;;  %3594 = vpow2.f32 %v3074_v60 }
 0x465   : > { %v3577_v4 = vpop.eup %3576  ;;  %v2622_v5 = vadd.f32 1.0, %v3575_v1 }
 0x466   : > { %v3579_v6 = vpop.eup %3578  ;;  %3596 = vrcp.f32 %v2621_v3  ;;  %v2628_v7 = vadd.f32 1.0, %v3577_v4 }
 0x467   : > { %v3581_v46 = vpop.eup %3580  ;;  %3598 = vrcp.f32 %v2622_v5  ;;  %v2627_v0 = vadd.f32 1.0, %v3579_v6 }
 0x468   : > { %v3583_v8 = vpop.eup %3582  ;;  %3600 = vrcp.f32 %v2628_v7  ;;  %v2629_v63 = vadd.f32 1.0, %v3581_v46 }
 0x469   : > { %v3585_v9 = vpop.eup %3584  ;;  %2691 = vst [vmem:[%s4663_s22] sm:$0xff] %v3583_v8  ;;  %3602 = vrcp.f32 %v2627_v0 }
 0x46a   : > { %v3587_v10 = vpop.eup %3586  ;;  %2692 = vst [vmem:[%s4663_s22 + $0x8] sm:$0xff] %v3585_v9  ;;  %3604 = vrcp.f32 %v2629_v63 }
 0x46b   : > { %v3589_v11 = vpop.eup %3588  ;;  %2698 = vst [vmem:[%s4663_s22 + $0x38] sm:$0xff] %v3587_v10 }
 0x46c   : > { %v3591_v12 = vpop.eup %3590  ;;  %2697 = vst.msk [vmem:[%s4663_s22 + $0x30] sm:$0xff] %vm980_vm0, %v3589_v11 }
 0x46d   : > { %v3593_v13 = vpop.eup %3592  ;;  %2699 = vst [vmem:[%s4663_s22 + $0x40] sm:$0xff] %v3591_v12  ;;  %v1722_v12 = vsub.s32 4, %v4221_v31 }
 0x46e   : > { %v3595_v14 = vpop.eup %3594  ;;  %2704 = vst.msk [vmem:[%s4663_s22 + $0x68] sm:$0xff] %vm980_vm0, %v3593_v13  ;;  %v1726_v13 = vsub.s32 5, %v4221_v31 }
 0x46f   : > { %v2634_v15 = vadd.f32 1.0, %v3595_v14  ;;  %v1723_v14 = vrot.slane %v4652_v2, %v1722_v12 }
 0x470   : > { %v3597_v16 = vpop.eup %3596 }
 0x471   : > { %v3599_v18 = vpop.eup %3598  ;;  %2705 = vst [vmem:[%s4663_s22 + $0x70] sm:$0xff] %v3597_v16  ;;  %3606 = vrcp.f32 %v2634_v15  ;;  %v1727_v15 = vrot.slane %v4652_v2, %v1726_v13 }
 0x472   : > { %v3601_v32 = vpop.eup %3600  ;;  %2706 = vst [vmem:[%s4663_s22 + $0x78] sm:$0xff] %v3599_v18 }
 0x473   : > { %v3603_v19 = vpop.eup %3602  ;;  %2712 = vst [vmem:[%s4663_s22 + $0xa8] sm:$0xff] %v3601_v32 }
 0x474   : > { %v3605_v20 = vpop.eup %3604  ;;  %2711 = vst.msk [vmem:[%s4663_s22 + $0xa0] sm:$0xff] %vm980_vm0, %v3603_v19 }
 0x475   : > { %2713 = vst [vmem:[%s4663_s22 + $0xb0] sm:$0xff] %v3605_v20 }
 0x47b   : > { %v3607_v34 = vpop.eup %3606 }
 0x47c   : > { %2718 = vst.msk [vmem:[%s4663_s22 + $0xd8] sm:$0xff] %vm980_vm0, %v3607_v34 }
 0x48c   : > { %v2402_v25 = vpop.f32.mrb[24].mxu1 }
 0x48d   : > { %v2403_v26 = vadd.f32 %v2402_v25, %v1715_v23  ;;  %v2404_v27 = vpop.f32.mrb[25].mxu1 }
 0x48e   : > { %v2405_v28 = vadd.f32 %v2404_v27, %v1719_v24  ;;  %v2406_v29 = vpop.f32.mrb[26].mxu1 }
 0x48f   : > { %v3049_v30 = vmul.f32 -1.442695, %v2403_v26  ;;  %v2407_v33 = vadd.f32 %v2406_v29, %v1715_v23  ;;  %v2408_v35 = vpop.f32.mrb[27].mxu1 }
 0x490   : > { %v3050_v36 = vmul.f32 -1.442695, %v2405_v28  ;;  %v2409_v37 = vadd.f32 %v2408_v35, %v1719_v24 }
 0x491   : > { %3608 = vpow2.f32 %v3049_v30  ;;  %v3056_v38 = vmul.f32 -1.442695, %v2407_v33 }
 0x492   : > { %3610 = vpow2.f32 %v3050_v36  ;;  %v3057_v39 = vmul.f32 -1.442695, %v2409_v37 }
 0x493   : > { %3612 = vpow2.f32 %v3056_v38 }
 0x494   : > { %3614 = vpow2.f32 %v3057_v39  ;;  %v2412_v40 = vpop.f32.mrb[28].mxu1 }
 0x495   : > { %v2413_v41 = vadd.f32 %v2412_v40, %v1715_v23  ;;  %v2414_v42 = vpop.f32.mrb[29].mxu1 }
 0x496   : > { %v2415_v43 = vadd.f32 %v2414_v42, %v1719_v24  ;;  %v2416_v44 = vpop.f32.mrb[30].mxu1 }
 0x497   : > { %v3063_v45 = vmul.f32 -1.442695, %v2413_v41  ;;  %v2417_v47 = vadd.f32 %v2416_v44, %v1715_v23  ;;  %v2418_v48 = vpop.f32.mrb[31].mxu1 }
 0x498   : > { %v3064_v49 = vmul.f32 -1.442695, %v2415_v43  ;;  %v2419_v50 = vadd.f32 %v2418_v48, %v1719_v24 }
 0x499   : > { %3616 = vpow2.f32 %v3063_v45  ;;  %v3070_v51 = vmul.f32 -1.442695, %v2417_v47 }
 0x49a   : > { %3618 = vpow2.f32 %v3064_v49  ;;  %v3071_v52 = vmul.f32 -1.442695, %v2419_v50 }
 0x49b   : > { %v3609_v53 = vpop.eup %3608  ;;  %3620 = vpow2.f32 %v3070_v51 }
 0x49c   : > { %v3611_v54 = vpop.eup %3610  ;;  %v2609_v55 = vadd.f32 1.0, %v3609_v53  ;;  %3622 = vpow2.f32 %v3071_v52 }
 0x49d   : > { %v3613_v56 = vpop.eup %3612  ;;  %v2610_v57 = vadd.f32 1.0, %v3611_v54 }
 0x49e   : > { %v3615_v58 = vpop.eup %3614  ;;  %3624 = vrcp.f32 %v2609_v55  ;;  %v2616_v59 = vadd.f32 1.0, %v3613_v56 }
 0x49f   : > { %3626 = vrcp.f32 %v2610_v57  ;;  %v2617_v17 = vadd.f32 1.0, %v3615_v58 }
 0x4a0   : > { %3628 = vrcp.f32 %v2616_v59 }
 0x4a1   : > { %3630 = vrcp.f32 %v2617_v17 }
 0x4a3   : > { %v3617_v60 = vpop.eup %3616 }
 0x4a4   : > { %v3619_v61 = vpop.eup %3618  ;;  %v2623_v62 = vadd.f32 1.0, %v3617_v60 }
 0x4a5   : > { %v3621_v1 = vpop.eup %3620  ;;  %v2624_v3 = vadd.f32 1.0, %v3619_v61 }
 0x4a6   : > { %v3623_v4 = vpop.eup %3622  ;;  %3632 = vrcp.f32 %v2623_v62  ;;  %v2630_v5 = vadd.f32 1.0, %v3621_v1 }
 0x4a7   : > { %3634 = vrcp.f32 %v2624_v3  ;;  %v2631_v6 = vadd.f32 1.0, %v3623_v4 }
 0x4a8   : > { %v3625_v7 = vpop.eup %3624  ;;  %3636 = vrcp.f32 %v2630_v5 }
 0x4a9   : > { %v3627_v46 = vpop.eup %3626  ;;  %2693 = vst [vmem:[%s4663_s22 + $0x10] sm:$0xff] %v3625_v7  ;;  %3638 = vrcp.f32 %v2631_v6 }
 0x4aa   : > { %v3629_v0 = vpop.eup %3628  ;;  %2694 = vst [vmem:[%s4663_s22 + $0x18] sm:$0xff] %v3627_v46 }
 0x4ab   : > { %v3631_v8 = vpop.eup %3630  ;;  %2700 = vst [vmem:[%s4663_s22 + $0x48] sm:$0xff] %v3629_v0 }
 0x4ac   : > { %2701 = vst [vmem:[%s4663_s22 + $0x50] sm:$0xff] %v3631_v8 }
 0x4b0   : > { %v3633_v63 = vpop.eup %3632 }
 0x4b1   : > { %v3635_v9 = vpop.eup %3634  ;;  %2707 = vst [vmem:[%s4663_s22 + $0x80] sm:$0xff] %v3633_v63 }
 0x4b2   : > { %v3637_v10 = vpop.eup %3636  ;;  %2708 = vst [vmem:[%s4663_s22 + $0x88] sm:$0xff] %v3635_v9 }
 0x4b3   : > { %v3639_v11 = vpop.eup %3638  ;;  %2714 = vst [vmem:[%s4663_s22 + $0xb8] sm:$0xff] %v3637_v10 }
 0x4b4   : > { %2715 = vst [vmem:[%s4663_s22 + $0xc0] sm:$0xff] %v3639_v11 }
 0x4cc   : > { %v2455_v16 = vpop.f32.mrb[32].mxu1 }
 0x4cd   : > { %v2456_v18 = vadd.f32 %v2455_v16, %v1723_v14  ;;  %v2457_v32 = vpop.f32.mrb[33].mxu1 }
 0x4ce   : > { %v2458_v19 = vadd.f32 %v2457_v32, %v1727_v15  ;;  %v2459_v20 = vpop.f32.mrb[34].mxu1 }
 0x4cf   : > { %v3051_v34 = vmul.f32 -1.442695, %v2456_v18  ;;  %v2460_v21 = vadd.f32 %v2459_v20, %v1723_v14  ;;  %v2461_v22 = vpop.f32.mrb[35].mxu1 }
 0x4d0   : > { %v3052_v23 = vmul.f32 -1.442695, %v2458_v19  ;;  %v2462_v24 = vadd.f32 %v2461_v22, %v1727_v15 }
 0x4d1   : > { %3640 = vpow2.f32 %v3051_v34  ;;  %v3058_v25 = vmul.f32 -1.442695, %v2460_v21 }
 0x4d2   : > { %3642 = vpow2.f32 %v3052_v23  ;;  %v3059_v26 = vmul.f32 -1.442695, %v2462_v24 }
 0x4d3   : > { %3644 = vpow2.f32 %v3058_v25 }
 0x4d4   : > { %3646 = vpow2.f32 %v3059_v26  ;;  %v2465_v31 = vpop.f32.mrb[36].mxu1 }
 0x4d5   : > { %v2466_v27 = vadd.f32 %v2465_v31, %v1723_v14  ;;  %v2467_v28 = vpop.f32.mrb[37].mxu1 }
 0x4d6   : > { %v2468_v2 = vadd.f32 %v2467_v28, %v1727_v15  ;;  %v2469_v29 = vpop.f32.mrb[38].mxu1 }
 0x4d7   : > { %v3065_v30 = vmul.f32 -1.442695, %v2466_v27  ;;  %v2470_v33 = vadd.f32 %v2469_v29, %v1723_v14  ;;  %v2471_v35 = vpop.f32.mrb[39].mxu1 }
 0x4d8   : > { %v3066_v36 = vmul.f32 -1.442695, %v2468_v2  ;;  %v2472_v37 = vadd.f32 %v2471_v35, %v1727_v15 }
 0x4d9   : > { %3648 = vpow2.f32 %v3065_v30  ;;  %v3072_v38 = vmul.f32 -1.442695, %v2470_v33 }
 0x4da   : > { %3650 = vpow2.f32 %v3066_v36  ;;  %v3073_v39 = vmul.f32 -1.442695, %v2472_v37 }
 0x4db   : > { %v3641_v40 = vpop.eup %3640  ;;  %3652 = vpow2.f32 %v3072_v38 }
 0x4dc   : > { %v3643_v41 = vpop.eup %3642  ;;  %v2611_v42 = vadd.f32 1.0, %v3641_v40  ;;  %3654 = vpow2.f32 %v3073_v39 }
 0x4dd   : > { %v3645_v43 = vpop.eup %3644  ;;  %v2612_v44 = vadd.f32 1.0, %v3643_v41 }
 0x4de   : > { %v3647_v45 = vpop.eup %3646  ;;  %3656 = vrcp.f32 %v2611_v42  ;;  %v2618_v47 = vadd.f32 1.0, %v3645_v43 }
 0x4df   : > { %3658 = vrcp.f32 %v2612_v44  ;;  %v2619_v48 = vadd.f32 1.0, %v3647_v45 }
 0x4e0   : > { %3660 = vrcp.f32 %v2618_v47 }
 0x4e1   : > { %3662 = vrcp.f32 %v2619_v48 }
 0x4e3   : > { %v3649_v49 = vpop.eup %3648 }
 0x4e4   : > { %v3651_v50 = vpop.eup %3650  ;;  %v2625_v51 = vadd.f32 1.0, %v3649_v49 }
 0x4e5   : > { %v3653_v52 = vpop.eup %3652  ;;  %v2626_v53 = vadd.f32 1.0, %v3651_v50 }
 0x4e6   : > { %v3655_v54 = vpop.eup %3654  ;;  %3664 = vrcp.f32 %v2625_v51  ;;  %v2632_v55 = vadd.f32 1.0, %v3653_v52 }
 0x4e7   : > { %3666 = vrcp.f32 %v2626_v53  ;;  %v2633_v56 = vadd.f32 1.0, %v3655_v54 }
 0x4e8   : > { %v3657_v57 = vpop.eup %3656  ;;  %3668 = vrcp.f32 %v2632_v55 }
 0x4e9   : > { %v3659_v58 = vpop.eup %3658  ;;  %2695 = vst [vmem:[%s4663_s22 + $0x20] sm:$0xff] %v3657_v57  ;;  %3670 = vrcp.f32 %v2633_v56 }
 0x4ea   : > { %v3661_v59 = vpop.eup %3660  ;;  %2696 = vst [vmem:[%s4663_s22 + $0x28] sm:$0xff] %v3659_v58 }
 0x4eb   : > { %v3663_v17 = vpop.eup %3662  ;;  %2702 = vst [vmem:[%s4663_s22 + $0x58] sm:$0xff] %v3661_v59 }
 0x4ec   : > { %2703 = vst [vmem:[%s4663_s22 + $0x60] sm:$0xff] %v3663_v17 }
 0x4f0   : > { %v3665_v60 = vpop.eup %3664 }
 0x4f1   : > { %v3667_v61 = vpop.eup %3666  ;;  %2709 = vst [vmem:[%s4663_s22 + $0x90] sm:$0xff] %v3665_v60 }
 0x4f2   : > { %v3669_v62 = vpop.eup %3668  ;;  %2710 = vst [vmem:[%s4663_s22 + $0x98] sm:$0xff] %v3667_v61 }
 0x4f3   : > { %v3671_v1 = vpop.eup %3670  ;;  %2716 = vst [vmem:[%s4663_s22 + $0xc8] sm:$0xff] %v3669_v62 }
 0x4f4   : > { %2717 = vst [vmem:[%s4663_s22 + $0xd0] sm:$0xff] %v3671_v1 }
 0x4f5   : > { %3685 = shalt.err (!%p3682_p3)
}
 0x4f6   : > { %s3686_s17 = scalar_lea.hbm %s4710_s27, 3584  ;;  %s3690_s23 = scalar_lea.hbm %s4766_s9, 7168 }
 0x4f7   : > { %p3687_p4 = scmp.ne.s32.totalorder %s4710_s27, %s3686_s17  ;;  %p3691_p9 = scmp.lt.u32.totalorder %s4710_s27, %s4766_s9 }
 0x4f8   : > { %p3692_p10 = scmp.lt.u32.totalorder %s3690_s23, %s3686_s17  ;;  %p3694_p12 = scmp.lt.u32.totalorder %s3686_s17, %s4710_s27 }
 0x4f9   : > { %p3688_p7 = pnand %p3687_p4, %p3828_p5 }
 0x4fa   : > { %p3693_p11 = por %p3692_p10, %p3691_p9 }
 0x4fb   : > { %p3689_p8 = pneg %p3688_p7 }
 0x4fc   : > { %p3695_p13 = por %p3694_p12, %p3693_p11 }
 0x4fe   : > { %p3696_p0 = pnand %p3695_p13, %p3689_p8 }
 0x500   : > { %3699 = shalt.err (!%p3696_p0)
}
 0x501   : > { %s3738_s14 = smov 896   ;;  %s3739_s24 = smov 56  }
 0x502   : > { %3171 = dma.vmem_to_hbm [thread:$0]  (%p3828_p5), %s4704_s25, 3584, %s4710_s27, %s4716_s13, %s3738_s14, %s3738_s14, %s3739_s24  }
 0x503 PF: > { %p3177_p1 = scmp.ge.s32.totalorder %s3734_s12, 2  ;;  %s2749_s16 = sand.u32 1, %s3722_s30  }
 0x504   : > { %s2750_s28 = scalar_lea.sflag [#allocation3], %s2749_s16 }
 0x505   : > { %p3174_p2 = pnand %p3177_p1, %p3832_p6 }
 0x507   : > { %3717 = dma.done.wait (!%p3174_p2), %s2750_s28, 3584  }
 0x508   : > { %3719 = vsyncadd (!%p3174_p2), %s2750_s28, 4294963712  ;;  %p19_p3 = scmp.ge.s32.totalorder %s3815_s15, 4   ;;  %s4769_s30 = smov %s3726_s10 }
 0x509   : > { %s4770_s10 = smov %s3730_s11  ;;  %s4771_s11 = smov %s3826_s18 }
 0x50a   : > { %s4772_s12 = smov %s3815_s15  ;;  %21 = sbr.rel (!%p19_p3) target bundleno = 3 (0x3), region = 91 }
 0x511   :  { %2755 = vsyncpa [#allocation3], 1 }
 0x512   :  { %2757 = vsyncpa [#allocation3 + $0x1], 1 }

</bundles_post_ra>
